<compile_context>
chip_gen: v6e
topology: v6e:2x2x1
jax: 0.10.0
libtpu: 0.0.40
codegen_flags: <defaults>
</compile_context>

<pallas_src>
import math

import jax
import jax.numpy as jnp
import numpy as np
from jax import lax
from jax.experimental import pallas as pl
from jax.experimental.pallas import tpu as pltpu

TIME_DECREMENTAL_SEQUENCE = True
TSANE_MIN_PROB_MARGIN = 10.0
FORECAST_SCALE = 4.0          # torch.tensor(4)
SELU_ALPHA = 1.6732632423543772
SELU_SCALE = 1.0507009873554805
OUT_LANES = 128               # lane-dense output slab width


def _softsign(x):
    return x / (1.0 + jnp.abs(x))


def _softsign_fast(x):
    # divide moves to the (otherwise idle) EUP slot inside the kernel
    return x * pl.reciprocal(1.0 + jnp.abs(x), approx=True)


def _selu(x):
    return SELU_SCALE * jnp.where(x > 0, x, SELU_ALPHA * (jnp.exp(x) - 1.0))


# ------------------------- parameter packing -------------------------------
def _pack_params(entries):
    """Pack named 2-D f32 arrays into one lane-padded slab.

    Each entry is zero-padded to (ceil(rows/8)*8, 128) and stacked along the
    row axis so the whole parameter set travels HBM->VMEM in a single DMA.
    Returns the packed buffer and a static {name: (row_off, rows, cols)} map.
    """
    width = 128
    for _, a in entries:
        width = max(width, -(-int(a.shape[1]) // 128) * 128)
    blocks, layout, off = [], {}, 0
    for name, a in entries:
        r, c = int(a.shape[0]), int(a.shape[1])
        rpad = -(-r // 8) * 8
        blk = jnp.zeros((rpad, width), jnp.float32).at[:r, :c].set(
            a.astype(jnp.float32))
        layout[name] = (off, r, c)
        blocks.append(blk)
        off += rpad
    return jnp.concatenate(blocks, axis=0), layout


def _block_diag(a, b):
    ra, ca = a.shape
    rb, cb = b.shape
    out = jnp.zeros((ra + rb, ca + cb), jnp.float32)
    return out.at[:ra, :ca].set(a).at[ra:, ca:].set(b)


# ------------------------- kernel ------------------------------------------
def make_kernel(S, Bp, B, H, UH, MH, US, MS, NH, layout):
    def kernel(x_ref, p_ref, out_ref):
        dot = lambda a, b: jnp.dot(a, b, preferred_element_type=jnp.float32)

        def P(name):
            off, r, c = layout[name]
            return p_ref[off:off + r, :c]          # static slice -> cheap load

        # --- RECURRENT_ENCODER: single-layer unidirectional GRU ------------
        wi = P('wi')                               # (A, 3H)  gates [r|z|n]
        wh = P('wh')                               # (H, 3H)
        bi = P('bi')                               # (1, 3H)  [bir+bhr|biz+bhz|bin]
        bhn = jnp.broadcast_to(P('bhn'), (Bp, H))  # hoisted broadcast
        pa = jnp.broadcast_to(P('pa'), (Bp, H))    # attention vector as a row

        x2d = x_ref[...]                           # (S*Bp, A), time-major rows
        # Input projection hoisted off the serial path: one MXU pass + bias add.
        xwi = dot(x2d, wi) + bi                    # (S*Bp, 3H)

        # Peeled t=0 step: h0 == 0 so dot(h, Wh) is skipped entirely.
        g = xwi[0:Bp]
        r = jax.nn.sigmoid(g[:, 0:H])
        z = jax.nn.sigmoid(g[:, H:2 * H])
        n = jnp.tanh(g[:, 2 * H:3 * H] + r * bhn)
        h = (1.0 - z) * n
        # online gram-trick attention: (enc^T enc) @ pa == sum_t h_t * (h_t . pa)
        acc = h * jnp.sum(h * pa, axis=-1, keepdims=True)

        # TODO(synk): Wh could be held in MXU weight registers across the
        # unrolled recurrence (pltpu.matmul_push_rhs / matmul_acc_lhs /
        # matmul_pop); kept as jnp.dot for portability.
        for t in range(1, S):
            g = xwi[t * Bp:(t + 1) * Bp]           # aligned (8-row) slice
            hwh = dot(h, wh)                       # (Bp, 3H) - only serial matmul
            r = jax.nn.sigmoid(g[:, 0:H] + hwh[:, 0:H])
            z = jax.nn.sigmoid(g[:, H:2 * H] + hwh[:, H:2 * H])
            n = jnp.tanh(g[:, 2 * H:3 * H] + r * (hwh[:, 2 * H:3 * H] + bhn))
            h = (1.0 - z) * n + z * h
            acc = acc + h * jnp.sum(h * pa, axis=-1, keepdims=True)

        # --- attention (pb @ belly) + forecast_1 folded into ONE matmul ------
        f = _softsign_fast(dot(acc, P('wenc')) + P('f1_b'))
        for name in ('f2', 'f3', 'f4', 'f5'):
            f = _softsign_fast(dot(f, P(name + '_w')) + P(name + '_b'))
        # final forecast layer exact (user-visible + feeds both heads)
        fc = FORECAST_SCALE * _softsign(dot(f, P('fp_w')) + P('fp_b'))

        # --- alliu state (TIME_DECREMENTAL_SEQUENCE -> first timestep) ------
        alliu = x2d[0:Bp]                          # rows of timestep 0

        # --- fused uwaabo(SELU) | munaajpi(Softsign) heads -------------------
        # block-diagonal weights: one matmul per layer, lane-masked activation.
        HW = UH + MH
        is_u = lax.broadcasted_iota(jnp.int32, (Bp, HW), 1) < UH
        y = dot(alliu, P('h1a_w')) + dot(fc, P('h1f_w')) + P('h1_b')
        y = jnp.where(is_u, _selu(y), _softsign_fast(y))
        for name in ('h2', 'h3', 'h4', 'h5'):
            y = dot(y, P(name + '_w')) + P(name + '_b')
            y = jnp.where(is_u, _selu(y), _softsign_fast(y))
        y = dot(y, P('hp_w')) + P('hp_b')          # (Bp, US + MS)
        u = _softsign(y[:, 0:US])                  # exact: feeds min/max/std
        mun = y[:, US:US + MS]                     # linear munaajpi output

        # marginalization over the VALID (B, US) block only (padding excluded),
        # then Categorical(probs=...) row-normalization (== .probs).
        uv = u[0:B]
        n_el = B * US
        umin = jnp.min(uv)
        umax = jnp.max(uv)
        umean = jnp.sum(uv) / n_el
        ustd = jnp.sqrt(jnp.sum((uv - umean) ** 2) / (n_el - 1))   # unbiased
        u2 = (u - umin + ustd / TSANE_MIN_PROB_MARGIN) / (umax - umin)
        cert = u2 / jnp.sum(u2, axis=1, keepdims=True)

        # single lane-dense output slab: [cert | mun | fc | zeros]
        out_ref[...] = jnp.zeros((Bp, OUT_LANES), jnp.float32)
        out_ref[:, 0:US] = cert
        out_ref[:, US:US + MS] = mun
        out_ref[:, US + MS:US + MS + NH] = fc

    return kernel


# ------------------------- wrapper ------------------------------------------
def pack_tsinuu_params(p, seq_size):
    """Pack all parameters (with GRU fusion, encoder fold and head fusion)."""
    H = p['whr'].shape[0]
    NH = p['fp_w'].shape[1]
    UH = p['u2_w'].shape[0]
    MH = p['m2_w'].shape[0]
    US = p['up_w'].shape[1]
    MS = p['mp_w'].shape[1]
    A = p['u1_w'].shape[0] - NH
    seq_scale = 1.0 / math.sqrt(seq_size)

    entries = [
        ('wi', jnp.concatenate([p['wir'], p['wiz'], p['win']], axis=1)),
        ('wh', jnp.concatenate([p['whr'], p['whz'], p['whn']], axis=1)),
        ('bi', jnp.concatenate([p['bir'] + p['bhr'],
                                p['biz'] + p['bhz'],
                                p['bin']], axis=1)),
        ('bhn', p['bhn']),
        ('pa', p['pa'].reshape(1, H)),
        # LINEAR_ENCODER_CONVERTER (scale, pb, belly) folded into forecast_1:
        ('wenc', seq_scale * (p['pb'] @ p['belly'] @ p['f1_w'])),
        ('f1_b', p['f1_b']),
    ]
    for n in ('f2', 'f3', 'f4', 'f5', 'fp'):
        entries += [(n + '_w', p[n + '_w']), (n + '_b', p[n + '_b'])]

    # fused uwaabo | munaajpi heads (shared input for layer 1, block-diag after)
    h1_w = jnp.concatenate([p['u1_w'], p['m1_w']], axis=1)     # (A+NH, UH+MH)
    entries += [('h1a_w', h1_w[:A]), ('h1f_w', h1_w[A:]),
                ('h1_b', jnp.concatenate([p['u1_b'], p['m1_b']], axis=1))]
    for i in ('2', '3', '4', '5'):
        entries += [('h' + i + '_w',
                     _block_diag(p['u' + i + '_w'], p['m' + i + '_w'])),
                    ('h' + i + '_b',
                     jnp.concatenate([p['u' + i + '_b'], p['m' + i + '_b']],
                                     axis=1))]
    entries += [('hp_w', _block_diag(p['up_w'], p['mp_w'])),
                ('hp_b', jnp.concatenate([p['up_b'], p['mp_b']], axis=1))]

    pbuf, layout = _pack_params(entries)           # single parameter DMA
    dims = dict(H=H, NH=NH, UH=UH, MH=MH, US=US, MS=MS, A=A)
    return pbuf, layout, dims


def make_tsinuu_forward(params, seq_size):
    """Pack params ONCE; return a jitted forward: x (B, S, ALLIU) ->
    (tsane_certainty, munaajpi, forecast)."""
    pbuf, layout, d = pack_tsinuu_params(params, seq_size)
    H, NH, UH, MH, US, MS = d['H'], d['NH'], d['UH'], d['MH'], d['US'], d['MS']

    @jax.jit
    def forward(x_bsa):
        B, S, A = x_bsa.shape
        Bp = -(-B // 8) * 8                        # pad batch to a sublane tile
        # time-major rows: row t*Bp + b == (timestep t, batch b)
        x_t = jnp.transpose(x_bsa, (1, 0, 2)).astype(jnp.float32)  # (S, B, A)
        if Bp != B:
            x_t = jnp.pad(x_t, ((0, 0), (0, Bp - B), (0, 0)))
        x2d = x_t.reshape(S * Bp, A)

        vmem = lambda: pl.BlockSpec(memory_space=pltpu.MemorySpace.VMEM)
        # TODO(synk): for production batch sizes add a batch grid axis with
        # dimension_semantics=("parallel",) so v7x's two TensorCores split B
        # (and re-derive x tiling under v7x's 64 MiB VMEM); at these sizes a
        # grid only adds ~0.35 us/step of fixed overhead.
        out = pl.pallas_call(
            make_kernel(S, Bp, B, H, UH, MH, US, MS, NH, layout),
            out_shape=jax.ShapeDtypeStruct((Bp, OUT_LANES), jnp.float32),
            in_specs=[vmem(), vmem()],
            out_specs=vmem(),
        )(x2d, pbuf)

        cert = out[:B, 0:US]
        mun = out[:B, US:US + MS]
        fc = out[:B, US + MS:US + MS + NH]
        return cert, mun, fc

    return forward


# ------------------------- parameter construction ---------------------------
def build_params(key, *, A, H, HB, FH, NH, UH, US, MH, MS):
    keys = iter(jax.random.split(key, 64))

    def uni(shape, lo, hi):
        return jax.random.uniform(next(keys), shape, jnp.float32, lo, hi)

    p = {}
    gb = 1.0 / math.sqrt(H)
    # PyTorch GRU layout: weight_ih (3H, A), weight_hh (3H, H), gate order [r, z, n]
    w_ih = uni((3 * H, A), -gb, gb)
    w_hh = uni((3 * H, H), -gb, gb)
    b_ih = uni((3 * H,), -gb, gb)
    b_hh = uni((3 * H,), -gb, gb)
    for i, g in enumerate(('r', 'z', 'n')):
        p['wi' + g] = w_ih[i * H:(i + 1) * H].T          # (A, H)
        p['wh' + g] = w_hh[i * H:(i + 1) * H].T          # (H, H)
        p['bi' + g] = b_ih[i * H:(i + 1) * H].reshape(1, H)
        p['bh' + g] = b_hh[i * H:(i + 1) * H].reshape(1, H)

    # attention params are torch.rand (U(0,1)) in the module; scaled down here
    # (deterministic synthetic init) to keep activations in a useful range.
    p['pa'] = uni((H, 1), 0.0, 0.1)
    p['pb'] = uni((H, HB), 0.0, 0.1)
    p['belly'] = uni((HB, HB), 0.0, 0.1)

    def linear(name, din, dout):
        b = 1.0 / math.sqrt(din)
        p[name + '_w'] = uni((din, dout), -b, b)         # stored as torch W.T
        p[name + '_b'] = uni((1, dout), -b, b)

    linear('f1', HB, FH)
    for i in ('2', '3', '4', '5'):
        linear('f' + i, FH, FH)
    linear('fp', FH, NH)

    linear('u1', A + NH, UH)
    for i in ('2', '3', '4', '5'):
        linear('u' + i, UH, UH)
    linear('up', UH, US)

    linear('m1', A + NH, MH)
    for i in ('2', '3', '4', '5'):
        linear('m' + i, MH, MH)
    linear('mp', MH, MS)
    return p


# ------------------------- pure-JAX reference (torch semantics) -------------
def reference_forward(x_bsa, p):
    B, S, A = x_bsa.shape
    H = p['whr'].shape[0]
    seq_scale = 1.0 / math.sqrt(S)

    def gru_step(h, x_t):
        r = jax.nn.sigmoid(x_t @ p['wir'] + p['bir'] + h @ p['whr'] + p['bhr'])
        z = jax.nn.sigmoid(x_t @ p['wiz'] + p['biz'] + h @ p['whz'] + p['bhz'])
        n = jnp.tanh(x_t @ p['win'] + p['bin'] + r * (h @ p['whn'] + p['bhn']))
        h_new = (1.0 - z) * n + z * h
        return h_new, h_new

    h0 = jnp.zeros((B, H), jnp.float32)
    _, enc = lax.scan(gru_step, h0, jnp.transpose(x_bsa, (1, 0, 2)))
    enc = jnp.transpose(enc, (1, 0, 2))                  # (B, S, H)

    g = jnp.einsum('bsh,bsk->bhk', enc, enc)             # x^T x
    att = jnp.einsum('bhk,ko->bho', g, p['pa'])[..., 0] * seq_scale
    att = att @ p['pb'] @ p['belly']

    f = att
    for n_ in ('f1', 'f2', 'f3', 'f4', 'f5'):
        f = _softsign(f @ p[n_ + '_w'] + p[n_ + '_b'])
    fc = FORECAST_SCALE * _softsign(f @ p['fp_w'] + p['fp_b'])

    alliu = x_bsa[:, 0, :] if TIME_DECREMENTAL_SEQUENCE else x_bsa[:, -1, :]
    z_in = jnp.concatenate([alliu, fc], axis=1)

    m = z_in
    for n_ in ('m1', 'm2', 'm3', 'm4', 'm5'):
        m = _softsign(m @ p[n_ + '_w'] + p[n_ + '_b'])
    mun = m @ p['mp_w'] + p['mp_b']

    u = z_in
    for n_ in ('u1', 'u2', 'u3', 'u4', 'u5'):
        u = _selu(u @ p[n_ + '_w'] + p[n_ + '_b'])
    u = _softsign(u @ p['up_w'] + p['up_b'])

    n_el = u.size
    ustd = jnp.sqrt(jnp.sum((u - u.mean()) ** 2) / (n_el - 1))
    u2 = (u - u.min() + ustd / TSANE_MIN_PROB_MARGIN) / (u.max() - u.min())
    cert = u2 / u2.sum(axis=-1, keepdims=True)
    return cert, mun, fc


if __name__ == "__main__":
    # small, module-consistent sizes
    B, S = 4, 8                    # batch, RECURRENT_SEQ_SIZE
    A, H, HB = 8, 16, 16           # ALLIU_SIZE, RECURRENT_HIDEN_SIZE, HIDDEN_BELLY_SIZE
    FH, NH = 32, 4                 # FORECAST_HIDDEN_SIZE, FORECAST_N_HORIZONS
    UH, US = 32, 3                 # UWAABO_HIDDEN_SIZE, UWAABO_SIZE
    MH, MS = 32, 1                 # MUNAAJPI_HIDDEN_SIZE, MUNAAJPI_SIZE

    key = jax.random.PRNGKey(0)
    kx, kp = jax.random.split(key)
    x = jax.random.normal(kx, (B, S, A), jnp.float32)
    params = build_params(kp, A=A, H=H, HB=HB, FH=FH, NH=NH,
                          UH=UH, US=US, MH=MH, MS=MS)

    forward = make_tsinuu_forward(params, seq_size=S)   # params packed once
    cert, mun, fc = jax.block_until_ready(forward(x))

    rcert, rmun, rfc = reference_forward(x, params)
    np.testing.assert_allclose(np.asarray(cert), np.asarray(rcert), rtol=2e-2, atol=2e-2)
    np.testing.assert_allclose(np.asarray(mun), np.asarray(rmun), rtol=2e-2, atol=2e-2)
    np.testing.assert_allclose(np.asarray(fc), np.asarray(rfc), rtol=2e-2, atol=2e-2)

    print("KERNEL_OK")
</pallas_src>

<mosaic_0001>
module attributes {stable_mosaic.version = 11 : i64} {
  func.func @kernel(%arg0: memref<64x8xf32, #tpu.memory_space<vmem>>, %arg1: memref<656x128xf32, #tpu.memory_space<vmem>>, %arg2: memref<8x128xf32, #tpu.memory_space<vmem>>) attributes {dimension_semantics = [], scalar_prefetch = 0 : i64, scratch_operands = 0 : i64, tpu.core_type = #tpu.core_type<tc>} {
    %c0 = arith.constant 0 : index
    %c0_0 = arith.constant 0 : index
    %0 = vector.load %arg1[%c0, %c0_0] : memref<656x128xf32, #tpu.memory_space<vmem>>, vector<8x48xf32>
    %c8 = arith.constant 8 : index
    %c0_1 = arith.constant 0 : index
    %1 = vector.load %arg1[%c8, %c0_1] : memref<656x128xf32, #tpu.memory_space<vmem>>, vector<16x48xf32>
    %c24 = arith.constant 24 : index
    %c0_2 = arith.constant 0 : index
    %2 = vector.load %arg1[%c24, %c0_2] : memref<656x128xf32, #tpu.memory_space<vmem>>, vector<1x48xf32>
    %c32 = arith.constant 32 : index
    %c0_3 = arith.constant 0 : index
    %3 = vector.load %arg1[%c32, %c0_3] : memref<656x128xf32, #tpu.memory_space<vmem>>, vector<1x16xf32>
    %4 = vector.shape_cast %3 : vector<1x16xf32> to vector<1x16xf32>
    %5 = vector.broadcast %4 : vector<1x16xf32> to vector<8x16xf32>
    %c40 = arith.constant 40 : index
    %c0_4 = arith.constant 0 : index
    %6 = vector.load %arg1[%c40, %c0_4] : memref<656x128xf32, #tpu.memory_space<vmem>>, vector<1x16xf32>
    %7 = vector.shape_cast %6 : vector<1x16xf32> to vector<1x16xf32>
    %8 = vector.broadcast %7 : vector<1x16xf32> to vector<8x16xf32>
    %c0_5 = arith.constant 0 : index
    %c0_6 = arith.constant 0 : index
    %9 = vector.load %arg0[%c0_5, %c0_6] : memref<64x8xf32, #tpu.memory_space<vmem>>, vector<64x8xf32>
    %cst = arith.constant dense<0.000000e+00> : vector<64x48xf32>
    %10 = tpu.matmul %9, %0, %cst {dimension_numbers = #tpu.dot_dimension_numbers<[1], [0], [0], [1], [0, 0, 1, 1], [], []>} : vector<64x8xf32>, vector<8x48xf32>, vector<64x48xf32> -> vector<64x48xf32>
    %11 = vector.broadcast %2 : vector<1x48xf32> to vector<64x48xf32>
    %12 = arith.addf %10, %11 : vector<64x48xf32>
    %13 = vector.extract_strided_slice %12 {offsets = [0, 0], sizes = [8, 48], strides = [1, 1]} : vector<64x48xf32> to vector<8x48xf32>
    %14 = vector.extract_strided_slice %13 {offsets = [0, 0], sizes = [8, 16], strides = [1, 1]} : vector<8x48xf32> to vector<8x16xf32>
    %15 = arith.negf %14 : vector<8x16xf32>
    %16 = math.exp %15 : vector<8x16xf32>
    %cst_7 = arith.constant 1.000000e+00 : f32
    %17 = vector.broadcast %cst_7 : f32 to vector<8x16xf32>
    %18 = arith.addf %17, %16 : vector<8x16xf32>
    %19 = arith.divf %17, %18 : vector<8x16xf32>
    %20 = vector.extract_strided_slice %13 {offsets = [0, 16], sizes = [8, 16], strides = [1, 1]} : vector<8x48xf32> to vector<8x16xf32>
    %21 = arith.negf %20 : vector<8x16xf32>
    %22 = math.exp %21 : vector<8x16xf32>
    %cst_8 = arith.constant 1.000000e+00 : f32
    %23 = vector.broadcast %cst_8 : f32 to vector<8x16xf32>
    %24 = arith.addf %23, %22 : vector<8x16xf32>
    %25 = arith.divf %23, %24 : vector<8x16xf32>
    %26 = vector.extract_strided_slice %13 {offsets = [0, 32], sizes = [8, 16], strides = [1, 1]} : vector<8x48xf32> to vector<8x16xf32>
    %27 = arith.mulf %19, %5 : vector<8x16xf32>
    %28 = arith.addf %26, %27 : vector<8x16xf32>
    %29 = math.tanh %28 : vector<8x16xf32>
    %cst_9 = arith.constant 1.000000e+00 : f32
    %30 = vector.broadcast %cst_9 : f32 to vector<8x16xf32>
    %31 = arith.subf %30, %25 : vector<8x16xf32>
    %32 = arith.mulf %31, %29 : vector<8x16xf32>
    %33 = arith.mulf %32, %8 : vector<8x16xf32>
    %cst_10 = arith.constant dense<0.000000e+00> : vector<8xf32>
    %34 = vector.multi_reduction <add>, %33, %cst_10 [1] : vector<8x16xf32> to vector<8xf32>
    %35 = vector.shape_cast %34 : vector<8xf32> to vector<8x1xf32>
    %36 = vector.broadcast %35 : vector<8x1xf32> to vector<8x16xf32>
    %37 = arith.mulf %32, %36 : vector<8x16xf32>
    %38 = vector.extract_strided_slice %12 {offsets = [8, 0], sizes = [8, 48], strides = [1, 1]} : vector<64x48xf32> to vector<8x48xf32>
    %cst_11 = arith.constant dense<0.000000e+00> : vector<8x48xf32>
    %39 = tpu.matmul %32, %1, %cst_11 {dimension_numbers = #tpu.dot_dimension_numbers<[1], [0], [0], [1], [0, 0, 1, 1], [], []>} : vector<8x16xf32>, vector<16x48xf32>, vector<8x48xf32> -> vector<8x48xf32>
    %40 = vector.extract_strided_slice %38 {offsets = [0, 0], sizes = [8, 16], strides = [1, 1]} : vector<8x48xf32> to vector<8x16xf32>
    %41 = vector.extract_strided_slice %39 {offsets = [0, 0], sizes = [8, 16], strides = [1, 1]} : vector<8x48xf32> to vector<8x16xf32>
    %42 = arith.addf %40, %41 : vector<8x16xf32>
    %43 = arith.negf %42 : vector<8x16xf32>
    %44 = math.exp %43 : vector<8x16xf32>
    %cst_12 = arith.constant 1.000000e+00 : f32
    %45 = vector.broadcast %cst_12 : f32 to vector<8x16xf32>
    %46 = arith.addf %45, %44 : vector<8x16xf32>
    %47 = arith.divf %45, %46 : vector<8x16xf32>
    %48 = vector.extract_strided_slice %38 {offsets = [0, 16], sizes = [8, 16], strides = [1, 1]} : vector<8x48xf32> to vector<8x16xf32>
    %49 = vector.extract_strided_slice %39 {offsets = [0, 16], sizes = [8, 16], strides = [1, 1]} : vector<8x48xf32> to vector<8x16xf32>
    %50 = arith.addf %48, %49 : vector<8x16xf32>
    %51 = arith.negf %50 : vector<8x16xf32>
    %52 = math.exp %51 : vector<8x16xf32>
    %cst_13 = arith.constant 1.000000e+00 : f32
    %53 = vector.broadcast %cst_13 : f32 to vector<8x16xf32>
    %54 = arith.addf %53, %52 : vector<8x16xf32>
    %55 = arith.divf %53, %54 : vector<8x16xf32>
    %56 = vector.extract_strided_slice %38 {offsets = [0, 32], sizes = [8, 16], strides = [1, 1]} : vector<8x48xf32> to vector<8x16xf32>
    %57 = vector.extract_strided_slice %39 {offsets = [0, 32], sizes = [8, 16], strides = [1, 1]} : vector<8x48xf32> to vector<8x16xf32>
    %58 = arith.addf %57, %5 : vector<8x16xf32>
    %59 = arith.mulf %47, %58 : vector<8x16xf32>
    %60 = arith.addf %56, %59 : vector<8x16xf32>
    %61 = math.tanh %60 : vector<8x16xf32>
    %cst_14 = arith.constant 1.000000e+00 : f32
    %62 = vector.broadcast %cst_14 : f32 to vector<8x16xf32>
    %63 = arith.subf %62, %55 : vector<8x16xf32>
    %64 = arith.mulf %63, %61 : vector<8x16xf32>
    %65 = arith.mulf %55, %32 : vector<8x16xf32>
    %66 = arith.addf %64, %65 : vector<8x16xf32>
    %67 = arith.mulf %66, %8 : vector<8x16xf32>
    %cst_15 = arith.constant dense<0.000000e+00> : vector<8xf32>
    %68 = vector.multi_reduction <add>, %67, %cst_15 [1] : vector<8x16xf32> to vector<8xf32>
    %69 = vector.shape_cast %68 : vector<8xf32> to vector<8x1xf32>
    %70 = vector.broadcast %69 : vector<8x1xf32> to vector<8x16xf32>
    %71 = arith.mulf %66, %70 : vector<8x16xf32>
    %72 = arith.addf %37, %71 : vector<8x16xf32>
    %73 = vector.extract_strided_slice %12 {offsets = [16, 0], sizes = [8, 48], strides = [1, 1]} : vector<64x48xf32> to vector<8x48xf32>
    %cst_16 = arith.constant dense<0.000000e+00> : vector<8x48xf32>
    %74 = tpu.matmul %66, %1, %cst_16 {dimension_numbers = #tpu.dot_dimension_numbers<[1], [0], [0], [1], [0, 0, 1, 1], [], []>} : vector<8x16xf32>, vector<16x48xf32>, vector<8x48xf32> -> vector<8x48xf32>
    %75 = vector.extract_strided_slice %73 {offsets = [0, 0], sizes = [8, 16], strides = [1, 1]} : vector<8x48xf32> to vector<8x16xf32>
    %76 = vector.extract_strided_slice %74 {offsets = [0, 0], sizes = [8, 16], strides = [1, 1]} : vector<8x48xf32> to vector<8x16xf32>
    %77 = arith.addf %75, %76 : vector<8x16xf32>
    %78 = arith.negf %77 : vector<8x16xf32>
    %79 = math.exp %78 : vector<8x16xf32>
    %cst_17 = arith.constant 1.000000e+00 : f32
    %80 = vector.broadcast %cst_17 : f32 to vector<8x16xf32>
    %81 = arith.addf %80, %79 : vector<8x16xf32>
    %82 = arith.divf %80, %81 : vector<8x16xf32>
    %83 = vector.extract_strided_slice %73 {offsets = [0, 16], sizes = [8, 16], strides = [1, 1]} : vector<8x48xf32> to vector<8x16xf32>
    %84 = vector.extract_strided_slice %74 {offsets = [0, 16], sizes = [8, 16], strides = [1, 1]} : vector<8x48xf32> to vector<8x16xf32>
    %85 = arith.addf %83, %84 : vector<8x16xf32>
    %86 = arith.negf %85 : vector<8x16xf32>
    %87 = math.exp %86 : vector<8x16xf32>
    %cst_18 = arith.constant 1.000000e+00 : f32
    %88 = vector.broadcast %cst_18 : f32 to vector<8x16xf32>
    %89 = arith.addf %88, %87 : vector<8x16xf32>
    %90 = arith.divf %88, %89 : vector<8x16xf32>
    %91 = vector.extract_strided_slice %73 {offsets = [0, 32], sizes = [8, 16], strides = [1, 1]} : vector<8x48xf32> to vector<8x16xf32>
    %92 = vector.extract_strided_slice %74 {offsets = [0, 32], sizes = [8, 16], strides = [1, 1]} : vector<8x48xf32> to vector<8x16xf32>
    %93 = arith.addf %92, %5 : vector<8x16xf32>
    %94 = arith.mulf %82, %93 : vector<8x16xf32>
    %95 = arith.addf %91, %94 : vector<8x16xf32>
    %96 = math.tanh %95 : vector<8x16xf32>
    %cst_19 = arith.constant 1.000000e+00 : f32
    %97 = vector.broadcast %cst_19 : f32 to vector<8x16xf32>
    %98 = arith.subf %97, %90 : vector<8x16xf32>
    %99 = arith.mulf %98, %96 : vector<8x16xf32>
    %100 = arith.mulf %90, %66 : vector<8x16xf32>
    %101 = arith.addf %99, %100 : vector<8x16xf32>
    %102 = arith.mulf %101, %8 : vector<8x16xf32>
    %cst_20 = arith.constant dense<0.000000e+00> : vector<8xf32>
    %103 = vector.multi_reduction <add>, %102, %cst_20 [1] : vector<8x16xf32> to vector<8xf32>
    %104 = vector.shape_cast %103 : vector<8xf32> to vector<8x1xf32>
    %105 = vector.broadcast %104 : vector<8x1xf32> to vector<8x16xf32>
    %106 = arith.mulf %101, %105 : vector<8x16xf32>
    %107 = arith.addf %72, %106 : vector<8x16xf32>
    %108 = vector.extract_strided_slice %12 {offsets = [24, 0], sizes = [8, 48], strides = [1, 1]} : vector<64x48xf32> to vector<8x48xf32>
    %cst_21 = arith.constant dense<0.000000e+00> : vector<8x48xf32>
    %109 = tpu.matmul %101, %1, %cst_21 {dimension_numbers = #tpu.dot_dimension_numbers<[1], [0], [0], [1], [0, 0, 1, 1], [], []>} : vector<8x16xf32>, vector<16x48xf32>, vector<8x48xf32> -> vector<8x48xf32>
    %110 = vector.extract_strided_slice %108 {offsets = [0, 0], sizes = [8, 16], strides = [1, 1]} : vector<8x48xf32> to vector<8x16xf32>
    %111 = vector.extract_strided_slice %109 {offsets = [0, 0], sizes = [8, 16], strides = [1, 1]} : vector<8x48xf32> to vector<8x16xf32>
    %112 = arith.addf %110, %111 : vector<8x16xf32>
    %113 = arith.negf %112 : vector<8x16xf32>
    %114 = math.exp %113 : vector<8x16xf32>
    %cst_22 = arith.constant 1.000000e+00 : f32
    %115 = vector.broadcast %cst_22 : f32 to vector<8x16xf32>
    %116 = arith.addf %115, %114 : vector<8x16xf32>
    %117 = arith.divf %115, %116 : vector<8x16xf32>
    %118 = vector.extract_strided_slice %108 {offsets = [0, 16], sizes = [8, 16], strides = [1, 1]} : vector<8x48xf32> to vector<8x16xf32>
    %119 = vector.extract_strided_slice %109 {offsets = [0, 16], sizes = [8, 16], strides = [1, 1]} : vector<8x48xf32> to vector<8x16xf32>
    %120 = arith.addf %118, %119 : vector<8x16xf32>
    %121 = arith.negf %120 : vector<8x16xf32>
    %122 = math.exp %121 : vector<8x16xf32>
    %cst_23 = arith.constant 1.000000e+00 : f32
    %123 = vector.broadcast %cst_23 : f32 to vector<8x16xf32>
    %124 = arith.addf %123, %122 : vector<8x16xf32>
    %125 = arith.divf %123, %124 : vector<8x16xf32>
    %126 = vector.extract_strided_slice %108 {offsets = [0, 32], sizes = [8, 16], strides = [1, 1]} : vector<8x48xf32> to vector<8x16xf32>
    %127 = vector.extract_strided_slice %109 {offsets = [0, 32], sizes = [8, 16], strides = [1, 1]} : vector<8x48xf32> to vector<8x16xf32>
    %128 = arith.addf %127, %5 : vector<8x16xf32>
    %129 = arith.mulf %117, %128 : vector<8x16xf32>
    %130 = arith.addf %126, %129 : vector<8x16xf32>
    %131 = math.tanh %130 : vector<8x16xf32>
    %cst_24 = arith.constant 1.000000e+00 : f32
    %132 = vector.broadcast %cst_24 : f32 to vector<8x16xf32>
    %133 = arith.subf %132, %125 : vector<8x16xf32>
    %134 = arith.mulf %133, %131 : vector<8x16xf32>
    %135 = arith.mulf %125, %101 : vector<8x16xf32>
    %136 = arith.addf %134, %135 : vector<8x16xf32>
    %137 = arith.mulf %136, %8 : vector<8x16xf32>
    %cst_25 = arith.constant dense<0.000000e+00> : vector<8xf32>
    %138 = vector.multi_reduction <add>, %137, %cst_25 [1] : vector<8x16xf32> to vector<8xf32>
    %139 = vector.shape_cast %138 : vector<8xf32> to vector<8x1xf32>
    %140 = vector.broadcast %139 : vector<8x1xf32> to vector<8x16xf32>
    %141 = arith.mulf %136, %140 : vector<8x16xf32>
    %142 = arith.addf %107, %141 : vector<8x16xf32>
    %143 = vector.extract_strided_slice %12 {offsets = [32, 0], sizes = [8, 48], strides = [1, 1]} : vector<64x48xf32> to vector<8x48xf32>
    %cst_26 = arith.constant dense<0.000000e+00> : vector<8x48xf32>
    %144 = tpu.matmul %136, %1, %cst_26 {dimension_numbers = #tpu.dot_dimension_numbers<[1], [0], [0], [1], [0, 0, 1, 1], [], []>} : vector<8x16xf32>, vector<16x48xf32>, vector<8x48xf32> -> vector<8x48xf32>
    %145 = vector.extract_strided_slice %143 {offsets = [0, 0], sizes = [8, 16], strides = [1, 1]} : vector<8x48xf32> to vector<8x16xf32>
    %146 = vector.extract_strided_slice %144 {offsets = [0, 0], sizes = [8, 16], strides = [1, 1]} : vector<8x48xf32> to vector<8x16xf32>
    %147 = arith.addf %145, %146 : vector<8x16xf32>
    %148 = arith.negf %147 : vector<8x16xf32>
    %149 = math.exp %148 : vector<8x16xf32>
    %cst_27 = arith.constant 1.000000e+00 : f32
    %150 = vector.broadcast %cst_27 : f32 to vector<8x16xf32>
    %151 = arith.addf %150, %149 : vector<8x16xf32>
    %152 = arith.divf %150, %151 : vector<8x16xf32>
    %153 = vector.extract_strided_slice %143 {offsets = [0, 16], sizes = [8, 16], strides = [1, 1]} : vector<8x48xf32> to vector<8x16xf32>
    %154 = vector.extract_strided_slice %144 {offsets = [0, 16], sizes = [8, 16], strides = [1, 1]} : vector<8x48xf32> to vector<8x16xf32>
    %155 = arith.addf %153, %154 : vector<8x16xf32>
    %156 = arith.negf %155 : vector<8x16xf32>
    %157 = math.exp %156 : vector<8x16xf32>
    %cst_28 = arith.constant 1.000000e+00 : f32
    %158 = vector.broadcast %cst_28 : f32 to vector<8x16xf32>
    %159 = arith.addf %158, %157 : vector<8x16xf32>
    %160 = arith.divf %158, %159 : vector<8x16xf32>
    %161 = vector.extract_strided_slice %143 {offsets = [0, 32], sizes = [8, 16], strides = [1, 1]} : vector<8x48xf32> to vector<8x16xf32>
    %162 = vector.extract_strided_slice %144 {offsets = [0, 32], sizes = [8, 16], strides = [1, 1]} : vector<8x48xf32> to vector<8x16xf32>
    %163 = arith.addf %162, %5 : vector<8x16xf32>
    %164 = arith.mulf %152, %163 : vector<8x16xf32>
    %165 = arith.addf %161, %164 : vector<8x16xf32>
    %166 = math.tanh %165 : vector<8x16xf32>
    %cst_29 = arith.constant 1.000000e+00 : f32
    %167 = vector.broadcast %cst_29 : f32 to vector<8x16xf32>
    %168 = arith.subf %167, %160 : vector<8x16xf32>
    %169 = arith.mulf %168, %166 : vector<8x16xf32>
    %170 = arith.mulf %160, %136 : vector<8x16xf32>
    %171 = arith.addf %169, %170 : vector<8x16xf32>
    %172 = arith.mulf %171, %8 : vector<8x16xf32>
    %cst_30 = arith.constant dense<0.000000e+00> : vector<8xf32>
    %173 = vector.multi_reduction <add>, %172, %cst_30 [1] : vector<8x16xf32> to vector<8xf32>
    %174 = vector.shape_cast %173 : vector<8xf32> to vector<8x1xf32>
    %175 = vector.broadcast %174 : vector<8x1xf32> to vector<8x16xf32>
    %176 = arith.mulf %171, %175 : vector<8x16xf32>
    %177 = arith.addf %142, %176 : vector<8x16xf32>
    %178 = vector.extract_strided_slice %12 {offsets = [40, 0], sizes = [8, 48], strides = [1, 1]} : vector<64x48xf32> to vector<8x48xf32>
    %cst_31 = arith.constant dense<0.000000e+00> : vector<8x48xf32>
    %179 = tpu.matmul %171, %1, %cst_31 {dimension_numbers = #tpu.dot_dimension_numbers<[1], [0], [0], [1], [0, 0, 1, 1], [], []>} : vector<8x16xf32>, vector<16x48xf32>, vector<8x48xf32> -> vector<8x48xf32>
    %180 = vector.extract_strided_slice %178 {offsets = [0, 0], sizes = [8, 16], strides = [1, 1]} : vector<8x48xf32> to vector<8x16xf32>
    %181 = vector.extract_strided_slice %179 {offsets = [0, 0], sizes = [8, 16], strides = [1, 1]} : vector<8x48xf32> to vector<8x16xf32>
    %182 = arith.addf %180, %181 : vector<8x16xf32>
    %183 = arith.negf %182 : vector<8x16xf32>
    %184 = math.exp %183 : vector<8x16xf32>
    %cst_32 = arith.constant 1.000000e+00 : f32
    %185 = vector.broadcast %cst_32 : f32 to vector<8x16xf32>
    %186 = arith.addf %185, %184 : vector<8x16xf32>
    %187 = arith.divf %185, %186 : vector<8x16xf32>
    %188 = vector.extract_strided_slice %178 {offsets = [0, 16], sizes = [8, 16], strides = [1, 1]} : vector<8x48xf32> to vector<8x16xf32>
    %189 = vector.extract_strided_slice %179 {offsets = [0, 16], sizes = [8, 16], strides = [1, 1]} : vector<8x48xf32> to vector<8x16xf32>
    %190 = arith.addf %188, %189 : vector<8x16xf32>
    %191 = arith.negf %190 : vector<8x16xf32>
    %192 = math.exp %191 : vector<8x16xf32>
    %cst_33 = arith.constant 1.000000e+00 : f32
    %193 = vector.broadcast %cst_33 : f32 to vector<8x16xf32>
    %194 = arith.addf %193, %192 : vector<8x16xf32>
    %195 = arith.divf %193, %194 : vector<8x16xf32>
    %196 = vector.extract_strided_slice %178 {offsets = [0, 32], sizes = [8, 16], strides = [1, 1]} : vector<8x48xf32> to vector<8x16xf32>
    %197 = vector.extract_strided_slice %179 {offsets = [0, 32], sizes = [8, 16], strides = [1, 1]} : vector<8x48xf32> to vector<8x16xf32>
    %198 = arith.addf %197, %5 : vector<8x16xf32>
    %199 = arith.mulf %187, %198 : vector<8x16xf32>
    %200 = arith.addf %196, %199 : vector<8x16xf32>
    %201 = math.tanh %200 : vector<8x16xf32>
    %cst_34 = arith.constant 1.000000e+00 : f32
    %202 = vector.broadcast %cst_34 : f32 to vector<8x16xf32>
    %203 = arith.subf %202, %195 : vector<8x16xf32>
    %204 = arith.mulf %203, %201 : vector<8x16xf32>
    %205 = arith.mulf %195, %171 : vector<8x16xf32>
    %206 = arith.addf %204, %205 : vector<8x16xf32>
    %207 = arith.mulf %206, %8 : vector<8x16xf32>
    %cst_35 = arith.constant dense<0.000000e+00> : vector<8xf32>
    %208 = vector.multi_reduction <add>, %207, %cst_35 [1] : vector<8x16xf32> to vector<8xf32>
    %209 = vector.shape_cast %208 : vector<8xf32> to vector<8x1xf32>
    %210 = vector.broadcast %209 : vector<8x1xf32> to vector<8x16xf32>
    %211 = arith.mulf %206, %210 : vector<8x16xf32>
    %212 = arith.addf %177, %211 : vector<8x16xf32>
    %213 = vector.extract_strided_slice %12 {offsets = [48, 0], sizes = [8, 48], strides = [1, 1]} : vector<64x48xf32> to vector<8x48xf32>
    %cst_36 = arith.constant dense<0.000000e+00> : vector<8x48xf32>
    %214 = tpu.matmul %206, %1, %cst_36 {dimension_numbers = #tpu.dot_dimension_numbers<[1], [0], [0], [1], [0, 0, 1, 1], [], []>} : vector<8x16xf32>, vector<16x48xf32>, vector<8x48xf32> -> vector<8x48xf32>
    %215 = vector.extract_strided_slice %213 {offsets = [0, 0], sizes = [8, 16], strides = [1, 1]} : vector<8x48xf32> to vector<8x16xf32>
    %216 = vector.extract_strided_slice %214 {offsets = [0, 0], sizes = [8, 16], strides = [1, 1]} : vector<8x48xf32> to vector<8x16xf32>
    %217 = arith.addf %215, %216 : vector<8x16xf32>
    %218 = arith.negf %217 : vector<8x16xf32>
    %219 = math.exp %218 : vector<8x16xf32>
    %cst_37 = arith.constant 1.000000e+00 : f32
    %220 = vector.broadcast %cst_37 : f32 to vector<8x16xf32>
    %221 = arith.addf %220, %219 : vector<8x16xf32>
    %222 = arith.divf %220, %221 : vector<8x16xf32>
    %223 = vector.extract_strided_slice %213 {offsets = [0, 16], sizes = [8, 16], strides = [1, 1]} : vector<8x48xf32> to vector<8x16xf32>
    %224 = vector.extract_strided_slice %214 {offsets = [0, 16], sizes = [8, 16], strides = [1, 1]} : vector<8x48xf32> to vector<8x16xf32>
    %225 = arith.addf %223, %224 : vector<8x16xf32>
    %226 = arith.negf %225 : vector<8x16xf32>
    %227 = math.exp %226 : vector<8x16xf32>
    %cst_38 = arith.constant 1.000000e+00 : f32
    %228 = vector.broadcast %cst_38 : f32 to vector<8x16xf32>
    %229 = arith.addf %228, %227 : vector<8x16xf32>
    %230 = arith.divf %228, %229 : vector<8x16xf32>
    %231 = vector.extract_strided_slice %213 {offsets = [0, 32], sizes = [8, 16], strides = [1, 1]} : vector<8x48xf32> to vector<8x16xf32>
    %232 = vector.extract_strided_slice %214 {offsets = [0, 32], sizes = [8, 16], strides = [1, 1]} : vector<8x48xf32> to vector<8x16xf32>
    %233 = arith.addf %232, %5 : vector<8x16xf32>
    %234 = arith.mulf %222, %233 : vector<8x16xf32>
    %235 = arith.addf %231, %234 : vector<8x16xf32>
    %236 = math.tanh %235 : vector<8x16xf32>
    %cst_39 = arith.constant 1.000000e+00 : f32
    %237 = vector.broadcast %cst_39 : f32 to vector<8x16xf32>
    %238 = arith.subf %237, %230 : vector<8x16xf32>
    %239 = arith.mulf %238, %236 : vector<8x16xf32>
    %240 = arith.mulf %230, %206 : vector<8x16xf32>
    %241 = arith.addf %239, %240 : vector<8x16xf32>
    %242 = arith.mulf %241, %8 : vector<8x16xf32>
    %cst_40 = arith.constant dense<0.000000e+00> : vector<8xf32>
    %243 = vector.multi_reduction <add>, %242, %cst_40 [1] : vector<8x16xf32> to vector<8xf32>
    %244 = vector.shape_cast %243 : vector<8xf32> to vector<8x1xf32>
    %245 = vector.broadcast %244 : vector<8x1xf32> to vector<8x16xf32>
    %246 = arith.mulf %241, %245 : vector<8x16xf32>
    %247 = arith.addf %212, %246 : vector<8x16xf32>
    %248 = vector.extract_strided_slice %12 {offsets = [56, 0], sizes = [8, 48], strides = [1, 1]} : vector<64x48xf32> to vector<8x48xf32>
    %cst_41 = arith.constant dense<0.000000e+00> : vector<8x48xf32>
    %249 = tpu.matmul %241, %1, %cst_41 {dimension_numbers = #tpu.dot_dimension_numbers<[1], [0], [0], [1], [0, 0, 1, 1], [], []>} : vector<8x16xf32>, vector<16x48xf32>, vector<8x48xf32> -> vector<8x48xf32>
    %250 = vector.extract_strided_slice %248 {offsets = [0, 0], sizes = [8, 16], strides = [1, 1]} : vector<8x48xf32> to vector<8x16xf32>
    %251 = vector.extract_strided_slice %249 {offsets = [0, 0], sizes = [8, 16], strides = [1, 1]} : vector<8x48xf32> to vector<8x16xf32>
    %252 = arith.addf %250, %251 : vector<8x16xf32>
    %253 = arith.negf %252 : vector<8x16xf32>
    %254 = math.exp %253 : vector<8x16xf32>
    %cst_42 = arith.constant 1.000000e+00 : f32
    %255 = vector.broadcast %cst_42 : f32 to vector<8x16xf32>
    %256 = arith.addf %255, %254 : vector<8x16xf32>
    %257 = arith.divf %255, %256 : vector<8x16xf32>
    %258 = vector.extract_strided_slice %248 {offsets = [0, 16], sizes = [8, 16], strides = [1, 1]} : vector<8x48xf32> to vector<8x16xf32>
    %259 = vector.extract_strided_slice %249 {offsets = [0, 16], sizes = [8, 16], strides = [1, 1]} : vector<8x48xf32> to vector<8x16xf32>
    %260 = arith.addf %258, %259 : vector<8x16xf32>
    %261 = arith.negf %260 : vector<8x16xf32>
    %262 = math.exp %261 : vector<8x16xf32>
    %cst_43 = arith.constant 1.000000e+00 : f32
    %263 = vector.broadcast %cst_43 : f32 to vector<8x16xf32>
    %264 = arith.addf %263, %262 : vector<8x16xf32>
    %265 = arith.divf %263, %264 : vector<8x16xf32>
    %266 = vector.extract_strided_slice %248 {offsets = [0, 32], sizes = [8, 16], strides = [1, 1]} : vector<8x48xf32> to vector<8x16xf32>
    %267 = vector.extract_strided_slice %249 {offsets = [0, 32], sizes = [8, 16], strides = [1, 1]} : vector<8x48xf32> to vector<8x16xf32>
    %268 = arith.addf %267, %5 : vector<8x16xf32>
    %269 = arith.mulf %257, %268 : vector<8x16xf32>
    %270 = arith.addf %266, %269 : vector<8x16xf32>
    %271 = math.tanh %270 : vector<8x16xf32>
    %cst_44 = arith.constant 1.000000e+00 : f32
    %272 = vector.broadcast %cst_44 : f32 to vector<8x16xf32>
    %273 = arith.subf %272, %265 : vector<8x16xf32>
    %274 = arith.mulf %273, %271 : vector<8x16xf32>
    %275 = arith.mulf %265, %241 : vector<8x16xf32>
    %276 = arith.addf %274, %275 : vector<8x16xf32>
    %277 = arith.mulf %276, %8 : vector<8x16xf32>
    %cst_45 = arith.constant dense<0.000000e+00> : vector<8xf32>
    %278 = vector.multi_reduction <add>, %277, %cst_45 [1] : vector<8x16xf32> to vector<8xf32>
    %279 = vector.shape_cast %278 : vector<8xf32> to vector<8x1xf32>
    %280 = vector.broadcast %279 : vector<8x1xf32> to vector<8x16xf32>
    %281 = arith.mulf %276, %280 : vector<8x16xf32>
    %282 = arith.addf %247, %281 : vector<8x16xf32>
    %c48 = arith.constant 48 : index
    %c0_46 = arith.constant 0 : index
    %283 = vector.load %arg1[%c48, %c0_46] : memref<656x128xf32, #tpu.memory_space<vmem>>, vector<16x32xf32>
    %cst_47 = arith.constant dense<0.000000e+00> : vector<8x32xf32>
    %284 = tpu.matmul %282, %283, %cst_47 {dimension_numbers = #tpu.dot_dimension_numbers<[1], [0], [0], [1], [0, 0, 1, 1], [], []>} : vector<8x16xf32>, vector<16x32xf32>, vector<8x32xf32> -> vector<8x32xf32>
    %c64 = arith.constant 64 : index
    %c0_48 = arith.constant 0 : index
    %285 = vector.load %arg1[%c64, %c0_48] : memref<656x128xf32, #tpu.memory_space<vmem>>, vector<1x32xf32>
    %286 = vector.broadcast %285 : vector<1x32xf32> to vector<8x32xf32>
    %287 = arith.addf %284, %286 : vector<8x32xf32>
    %288 = math.absf %287 : vector<8x32xf32>
    %cst_49 = arith.constant 1.000000e+00 : f32
    %289 = vector.broadcast %cst_49 : f32 to vector<8x32xf32>
    %290 = arith.addf %289, %288 : vector<8x32xf32>
    %291 = tpu.reciprocal %290 {approx = true} : vector<8x32xf32> -> vector<8x32xf32>
    %292 = arith.mulf %287, %291 : vector<8x32xf32>
    %c72 = arith.constant 72 : index
    %c0_50 = arith.constant 0 : index
    %293 = vector.load %arg1[%c72, %c0_50] : memref<656x128xf32, #tpu.memory_space<vmem>>, vector<32x32xf32>
    %cst_51 = arith.constant dense<0.000000e+00> : vector<8x32xf32>
    %294 = tpu.matmul %292, %293, %cst_51 {dimension_numbers = #tpu.dot_dimension_numbers<[1], [0], [0], [1], [0, 0, 1, 1], [], []>} : vector<8x32xf32>, vector<32x32xf32>, vector<8x32xf32> -> vector<8x32xf32>
    %c104 = arith.constant 104 : index
    %c0_52 = arith.constant 0 : index
    %295 = vector.load %arg1[%c104, %c0_52] : memref<656x128xf32, #tpu.memory_space<vmem>>, vector<1x32xf32>
    %296 = vector.broadcast %295 : vector<1x32xf32> to vector<8x32xf32>
    %297 = arith.addf %294, %296 : vector<8x32xf32>
    %298 = math.absf %297 : vector<8x32xf32>
    %cst_53 = arith.constant 1.000000e+00 : f32
    %299 = vector.broadcast %cst_53 : f32 to vector<8x32xf32>
    %300 = arith.addf %299, %298 : vector<8x32xf32>
    %301 = tpu.reciprocal %300 {approx = true} : vector<8x32xf32> -> vector<8x32xf32>
    %302 = arith.mulf %297, %301 : vector<8x32xf32>
    %c112 = arith.constant 112 : index
    %c0_54 = arith.constant 0 : index
    %303 = vector.load %arg1[%c112, %c0_54] : memref<656x128xf32, #tpu.memory_space<vmem>>, vector<32x32xf32>
    %cst_55 = arith.constant dense<0.000000e+00> : vector<8x32xf32>
    %304 = tpu.matmul %302, %303, %cst_55 {dimension_numbers = #tpu.dot_dimension_numbers<[1], [0], [0], [1], [0, 0, 1, 1], [], []>} : vector<8x32xf32>, vector<32x32xf32>, vector<8x32xf32> -> vector<8x32xf32>
    %c144 = arith.constant 144 : index
    %c0_56 = arith.constant 0 : index
    %305 = vector.load %arg1[%c144, %c0_56] : memref<656x128xf32, #tpu.memory_space<vmem>>, vector<1x32xf32>
    %306 = vector.broadcast %305 : vector<1x32xf32> to vector<8x32xf32>
    %307 = arith.addf %304, %306 : vector<8x32xf32>
    %308 = math.absf %307 : vector<8x32xf32>
    %cst_57 = arith.constant 1.000000e+00 : f32
    %309 = vector.broadcast %cst_57 : f32 to vector<8x32xf32>
    %310 = arith.addf %309, %308 : vector<8x32xf32>
    %311 = tpu.reciprocal %310 {approx = true} : vector<8x32xf32> -> vector<8x32xf32>
    %312 = arith.mulf %307, %311 : vector<8x32xf32>
    %c152 = arith.constant 152 : index
    %c0_58 = arith.constant 0 : index
    %313 = vector.load %arg1[%c152, %c0_58] : memref<656x128xf32, #tpu.memory_space<vmem>>, vector<32x32xf32>
    %cst_59 = arith.constant dense<0.000000e+00> : vector<8x32xf32>
    %314 = tpu.matmul %312, %313, %cst_59 {dimension_numbers = #tpu.dot_dimension_numbers<[1], [0], [0], [1], [0, 0, 1, 1], [], []>} : vector<8x32xf32>, vector<32x32xf32>, vector<8x32xf32> -> vector<8x32xf32>
    %c184 = arith.constant 184 : index
    %c0_60 = arith.constant 0 : index
    %315 = vector.load %arg1[%c184, %c0_60] : memref<656x128xf32, #tpu.memory_space<vmem>>, vector<1x32xf32>
    %316 = vector.broadcast %315 : vector<1x32xf32> to vector<8x32xf32>
    %317 = arith.addf %314, %316 : vector<8x32xf32>
    %318 = math.absf %317 : vector<8x32xf32>
    %cst_61 = arith.constant 1.000000e+00 : f32
    %319 = vector.broadcast %cst_61 : f32 to vector<8x32xf32>
    %320 = arith.addf %319, %318 : vector<8x32xf32>
    %321 = tpu.reciprocal %320 {approx = true} : vector<8x32xf32> -> vector<8x32xf32>
    %322 = arith.mulf %317, %321 : vector<8x32xf32>
    %c192 = arith.constant 192 : index
    %c0_62 = arith.constant 0 : index
    %323 = vector.load %arg1[%c192, %c0_62] : memref<656x128xf32, #tpu.memory_space<vmem>>, vector<32x32xf32>
    %cst_63 = arith.constant dense<0.000000e+00> : vector<8x32xf32>
    %324 = tpu.matmul %322, %323, %cst_63 {dimension_numbers = #tpu.dot_dimension_numbers<[1], [0], [0], [1], [0, 0, 1, 1], [], []>} : vector<8x32xf32>, vector<32x32xf32>, vector<8x32xf32> -> vector<8x32xf32>
    %c224 = arith.constant 224 : index
    %c0_64 = arith.constant 0 : index
    %325 = vector.load %arg1[%c224, %c0_64] : memref<656x128xf32, #tpu.memory_space<vmem>>, vector<1x32xf32>
    %326 = vector.broadcast %325 : vector<1x32xf32> to vector<8x32xf32>
    %327 = arith.addf %324, %326 : vector<8x32xf32>
    %328 = math.absf %327 : vector<8x32xf32>
    %cst_65 = arith.constant 1.000000e+00 : f32
    %329 = vector.broadcast %cst_65 : f32 to vector<8x32xf32>
    %330 = arith.addf %329, %328 : vector<8x32xf32>
    %331 = tpu.reciprocal %330 {approx = true} : vector<8x32xf32> -> vector<8x32xf32>
    %332 = arith.mulf %327, %331 : vector<8x32xf32>
    %c232 = arith.constant 232 : index
    %c0_66 = arith.constant 0 : index
    %333 = vector.load %arg1[%c232, %c0_66] : memref<656x128xf32, #tpu.memory_space<vmem>>, vector<32x4xf32>
    %cst_67 = arith.constant dense<0.000000e+00> : vector<8x4xf32>
    %334 = tpu.matmul %332, %333, %cst_67 {dimension_numbers = #tpu.dot_dimension_numbers<[1], [0], [0], [1], [0, 0, 1, 1], [], []>} : vector<8x32xf32>, vector<32x4xf32>, vector<8x4xf32> -> vector<8x4xf32>
    %c264 = arith.constant 264 : index
    %c0_68 = arith.constant 0 : index
    %335 = vector.load %arg1[%c264, %c0_68] : memref<656x128xf32, #tpu.memory_space<vmem>>, vector<1x4xf32>
    %336 = vector.broadcast %335 : vector<1x4xf32> to vector<8x4xf32>
    %337 = arith.addf %334, %336 : vector<8x4xf32>
    %338 = math.absf %337 : vector<8x4xf32>
    %cst_69 = arith.constant 1.000000e+00 : f32
    %339 = vector.broadcast %cst_69 : f32 to vector<8x4xf32>
    %340 = arith.addf %339, %338 : vector<8x4xf32>
    %341 = arith.divf %337, %340 : vector<8x4xf32>
    %cst_70 = arith.constant 4.000000e+00 : f32
    %342 = vector.broadcast %cst_70 : f32 to vector<8x4xf32>
    %343 = arith.mulf %342, %341 : vector<8x4xf32>
    %344 = vector.extract_strided_slice %9 {offsets = [0, 0], sizes = [8, 8], strides = [1, 1]} : vector<64x8xf32> to vector<8x8xf32>
    %345 = tpu.iota {dimensions = array<i32: 1>} : vector<8x64xi32>
    %c32_i32 = arith.constant 32 : i32
    %346 = vector.broadcast %c32_i32 : i32 to vector<8x64xi32>
    %347 = arith.cmpi slt, %345, %346 : vector<8x64xi32>
    %c272 = arith.constant 272 : index
    %c0_71 = arith.constant 0 : index
    %348 = vector.load %arg1[%c272, %c0_71] : memref<656x128xf32, #tpu.memory_space<vmem>>, vector<8x64xf32>
    %cst_72 = arith.constant dense<0.000000e+00> : vector<8x64xf32>
    %349 = tpu.matmul %344, %348, %cst_72 {dimension_numbers = #tpu.dot_dimension_numbers<[1], [0], [0], [1], [0, 0, 1, 1], [], []>} : vector<8x8xf32>, vector<8x64xf32>, vector<8x64xf32> -> vector<8x64xf32>
    %c280 = arith.constant 280 : index
    %c0_73 = arith.constant 0 : index
    %350 = vector.load %arg1[%c280, %c0_73] : memref<656x128xf32, #tpu.memory_space<vmem>>, vector<4x64xf32>
    %cst_74 = arith.constant dense<0.000000e+00> : vector<8x64xf32>
    %351 = tpu.matmul %343, %350, %cst_74 {dimension_numbers = #tpu.dot_dimension_numbers<[1], [0], [0], [1], [0, 0, 1, 1], [], []>} : vector<8x4xf32>, vector<4x64xf32>, vector<8x64xf32> -> vector<8x64xf32>
    %352 = arith.addf %349, %351 : vector<8x64xf32>
    %c288 = arith.constant 288 : index
    %c0_75 = arith.constant 0 : index
    %353 = vector.load %arg1[%c288, %c0_75] : memref<656x128xf32, #tpu.memory_space<vmem>>, vector<1x64xf32>
    %354 = vector.broadcast %353 : vector<1x64xf32> to vector<8x64xf32>
    %355 = arith.addf %352, %354 : vector<8x64xf32>
    %cst_76 = arith.constant 0.000000e+00 : f32
    %356 = vector.broadcast %cst_76 : f32 to vector<8x64xf32>
    %357 = arith.cmpf ogt, %355, %356 : vector<8x64xf32>
    %358 = math.exp %355 : vector<8x64xf32>
    %cst_77 = arith.constant 1.000000e+00 : f32
    %359 = vector.broadcast %cst_77 : f32 to vector<8x64xf32>
    %360 = arith.subf %358, %359 : vector<8x64xf32>
    %cst_78 = arith.constant 1.67326319 : f32
    %361 = vector.broadcast %cst_78 : f32 to vector<8x64xf32>
    %362 = arith.mulf %361, %360 : vector<8x64xf32>
    %363 = arith.select %357, %355, %362 : vector<8x64xi1>, vector<8x64xf32>
    %cst_79 = arith.constant 1.05070102 : f32
    %364 = vector.broadcast %cst_79 : f32 to vector<8x64xf32>
    %365 = arith.mulf %364, %363 : vector<8x64xf32>
    %366 = math.absf %355 : vector<8x64xf32>
    %cst_80 = arith.constant 1.000000e+00 : f32
    %367 = vector.broadcast %cst_80 : f32 to vector<8x64xf32>
    %368 = arith.addf %367, %366 : vector<8x64xf32>
    %369 = tpu.reciprocal %368 {approx = true} : vector<8x64xf32> -> vector<8x64xf32>
    %370 = arith.mulf %355, %369 : vector<8x64xf32>
    %371 = arith.select %347, %365, %370 : vector<8x64xi1>, vector<8x64xf32>
    %c296 = arith.constant 296 : index
    %c0_81 = arith.constant 0 : index
    %372 = vector.load %arg1[%c296, %c0_81] : memref<656x128xf32, #tpu.memory_space<vmem>>, vector<64x64xf32>
    %cst_82 = arith.constant dense<0.000000e+00> : vector<8x64xf32>
    %373 = tpu.matmul %371, %372, %cst_82 {dimension_numbers = #tpu.dot_dimension_numbers<[1], [0], [0], [1], [0, 0, 1, 1], [], []>} : vector<8x64xf32>, vector<64x64xf32>, vector<8x64xf32> -> vector<8x64xf32>
    %c360 = arith.constant 360 : index
    %c0_83 = arith.constant 0 : index
    %374 = vector.load %arg1[%c360, %c0_83] : memref<656x128xf32, #tpu.memory_space<vmem>>, vector<1x64xf32>
    %375 = vector.broadcast %374 : vector<1x64xf32> to vector<8x64xf32>
    %376 = arith.addf %373, %375 : vector<8x64xf32>
    %cst_84 = arith.constant 0.000000e+00 : f32
    %377 = vector.broadcast %cst_84 : f32 to vector<8x64xf32>
    %378 = arith.cmpf ogt, %376, %377 : vector<8x64xf32>
    %379 = math.exp %376 : vector<8x64xf32>
    %cst_85 = arith.constant 1.000000e+00 : f32
    %380 = vector.broadcast %cst_85 : f32 to vector<8x64xf32>
    %381 = arith.subf %379, %380 : vector<8x64xf32>
    %cst_86 = arith.constant 1.67326319 : f32
    %382 = vector.broadcast %cst_86 : f32 to vector<8x64xf32>
    %383 = arith.mulf %382, %381 : vector<8x64xf32>
    %384 = arith.select %378, %376, %383 : vector<8x64xi1>, vector<8x64xf32>
    %cst_87 = arith.constant 1.05070102 : f32
    %385 = vector.broadcast %cst_87 : f32 to vector<8x64xf32>
    %386 = arith.mulf %385, %384 : vector<8x64xf32>
    %387 = math.absf %376 : vector<8x64xf32>
    %cst_88 = arith.constant 1.000000e+00 : f32
    %388 = vector.broadcast %cst_88 : f32 to vector<8x64xf32>
    %389 = arith.addf %388, %387 : vector<8x64xf32>
    %390 = tpu.reciprocal %389 {approx = true} : vector<8x64xf32> -> vector<8x64xf32>
    %391 = arith.mulf %376, %390 : vector<8x64xf32>
    %392 = arith.select %347, %386, %391 : vector<8x64xi1>, vector<8x64xf32>
    %c368 = arith.constant 368 : index
    %c0_89 = arith.constant 0 : index
    %393 = vector.load %arg1[%c368, %c0_89] : memref<656x128xf32, #tpu.memory_space<vmem>>, vector<64x64xf32>
    %cst_90 = arith.constant dense<0.000000e+00> : vector<8x64xf32>
    %394 = tpu.matmul %392, %393, %cst_90 {dimension_numbers = #tpu.dot_dimension_numbers<[1], [0], [0], [1], [0, 0, 1, 1], [], []>} : vector<8x64xf32>, vector<64x64xf32>, vector<8x64xf32> -> vector<8x64xf32>
    %c432 = arith.constant 432 : index
    %c0_91 = arith.constant 0 : index
    %395 = vector.load %arg1[%c432, %c0_91] : memref<656x128xf32, #tpu.memory_space<vmem>>, vector<1x64xf32>
    %396 = vector.broadcast %395 : vector<1x64xf32> to vector<8x64xf32>
    %397 = arith.addf %394, %396 : vector<8x64xf32>
    %cst_92 = arith.constant 0.000000e+00 : f32
    %398 = vector.broadcast %cst_92 : f32 to vector<8x64xf32>
    %399 = arith.cmpf ogt, %397, %398 : vector<8x64xf32>
    %400 = math.exp %397 : vector<8x64xf32>
    %cst_93 = arith.constant 1.000000e+00 : f32
    %401 = vector.broadcast %cst_93 : f32 to vector<8x64xf32>
    %402 = arith.subf %400, %401 : vector<8x64xf32>
    %cst_94 = arith.constant 1.67326319 : f32
    %403 = vector.broadcast %cst_94 : f32 to vector<8x64xf32>
    %404 = arith.mulf %403, %402 : vector<8x64xf32>
    %405 = arith.select %399, %397, %404 : vector<8x64xi1>, vector<8x64xf32>
    %cst_95 = arith.constant 1.05070102 : f32
    %406 = vector.broadcast %cst_95 : f32 to vector<8x64xf32>
    %407 = arith.mulf %406, %405 : vector<8x64xf32>
    %408 = math.absf %397 : vector<8x64xf32>
    %cst_96 = arith.constant 1.000000e+00 : f32
    %409 = vector.broadcast %cst_96 : f32 to vector<8x64xf32>
    %410 = arith.addf %409, %408 : vector<8x64xf32>
    %411 = tpu.reciprocal %410 {approx = true} : vector<8x64xf32> -> vector<8x64xf32>
    %412 = arith.mulf %397, %411 : vector<8x64xf32>
    %413 = arith.select %347, %407, %412 : vector<8x64xi1>, vector<8x64xf32>
    %c440 = arith.constant 440 : index
    %c0_97 = arith.constant 0 : index
    %414 = vector.load %arg1[%c440, %c0_97] : memref<656x128xf32, #tpu.memory_space<vmem>>, vector<64x64xf32>
    %cst_98 = arith.constant dense<0.000000e+00> : vector<8x64xf32>
    %415 = tpu.matmul %413, %414, %cst_98 {dimension_numbers = #tpu.dot_dimension_numbers<[1], [0], [0], [1], [0, 0, 1, 1], [], []>} : vector<8x64xf32>, vector<64x64xf32>, vector<8x64xf32> -> vector<8x64xf32>
    %c504 = arith.constant 504 : index
    %c0_99 = arith.constant 0 : index
    %416 = vector.load %arg1[%c504, %c0_99] : memref<656x128xf32, #tpu.memory_space<vmem>>, vector<1x64xf32>
    %417 = vector.broadcast %416 : vector<1x64xf32> to vector<8x64xf32>
    %418 = arith.addf %415, %417 : vector<8x64xf32>
    %cst_100 = arith.constant 0.000000e+00 : f32
    %419 = vector.broadcast %cst_100 : f32 to vector<8x64xf32>
    %420 = arith.cmpf ogt, %418, %419 : vector<8x64xf32>
    %421 = math.exp %418 : vector<8x64xf32>
    %cst_101 = arith.constant 1.000000e+00 : f32
    %422 = vector.broadcast %cst_101 : f32 to vector<8x64xf32>
    %423 = arith.subf %421, %422 : vector<8x64xf32>
    %cst_102 = arith.constant 1.67326319 : f32
    %424 = vector.broadcast %cst_102 : f32 to vector<8x64xf32>
    %425 = arith.mulf %424, %423 : vector<8x64xf32>
    %426 = arith.select %420, %418, %425 : vector<8x64xi1>, vector<8x64xf32>
    %cst_103 = arith.constant 1.05070102 : f32
    %427 = vector.broadcast %cst_103 : f32 to vector<8x64xf32>
    %428 = arith.mulf %427, %426 : vector<8x64xf32>
    %429 = math.absf %418 : vector<8x64xf32>
    %cst_104 = arith.constant 1.000000e+00 : f32
    %430 = vector.broadcast %cst_104 : f32 to vector<8x64xf32>
    %431 = arith.addf %430, %429 : vector<8x64xf32>
    %432 = tpu.reciprocal %431 {approx = true} : vector<8x64xf32> -> vector<8x64xf32>
    %433 = arith.mulf %418, %432 : vector<8x64xf32>
    %434 = arith.select %347, %428, %433 : vector<8x64xi1>, vector<8x64xf32>
    %c512 = arith.constant 512 : index
    %c0_105 = arith.constant 0 : index
    %435 = vector.load %arg1[%c512, %c0_105] : memref<656x128xf32, #tpu.memory_space<vmem>>, vector<64x64xf32>
    %cst_106 = arith.constant dense<0.000000e+00> : vector<8x64xf32>
    %436 = tpu.matmul %434, %435, %cst_106 {dimension_numbers = #tpu.dot_dimension_numbers<[1], [0], [0], [1], [0, 0, 1, 1], [], []>} : vector<8x64xf32>, vector<64x64xf32>, vector<8x64xf32> -> vector<8x64xf32>
    %c576 = arith.constant 576 : index
    %c0_107 = arith.constant 0 : index
    %437 = vector.load %arg1[%c576, %c0_107] : memref<656x128xf32, #tpu.memory_space<vmem>>, vector<1x64xf32>
    %438 = vector.broadcast %437 : vector<1x64xf32> to vector<8x64xf32>
    %439 = arith.addf %436, %438 : vector<8x64xf32>
    %cst_108 = arith.constant 0.000000e+00 : f32
    %440 = vector.broadcast %cst_108 : f32 to vector<8x64xf32>
    %441 = arith.cmpf ogt, %439, %440 : vector<8x64xf32>
    %442 = math.exp %439 : vector<8x64xf32>
    %cst_109 = arith.constant 1.000000e+00 : f32
    %443 = vector.broadcast %cst_109 : f32 to vector<8x64xf32>
    %444 = arith.subf %442, %443 : vector<8x64xf32>
    %cst_110 = arith.constant 1.67326319 : f32
    %445 = vector.broadcast %cst_110 : f32 to vector<8x64xf32>
    %446 = arith.mulf %445, %444 : vector<8x64xf32>
    %447 = arith.select %441, %439, %446 : vector<8x64xi1>, vector<8x64xf32>
    %cst_111 = arith.constant 1.05070102 : f32
    %448 = vector.broadcast %cst_111 : f32 to vector<8x64xf32>
    %449 = arith.mulf %448, %447 : vector<8x64xf32>
    %450 = math.absf %439 : vector<8x64xf32>
    %cst_112 = arith.constant 1.000000e+00 : f32
    %451 = vector.broadcast %cst_112 : f32 to vector<8x64xf32>
    %452 = arith.addf %451, %450 : vector<8x64xf32>
    %453 = tpu.reciprocal %452 {approx = true} : vector<8x64xf32> -> vector<8x64xf32>
    %454 = arith.mulf %439, %453 : vector<8x64xf32>
    %455 = arith.select %347, %449, %454 : vector<8x64xi1>, vector<8x64xf32>
    %c584 = arith.constant 584 : index
    %c0_113 = arith.constant 0 : index
    %456 = vector.load %arg1[%c584, %c0_113] : memref<656x128xf32, #tpu.memory_space<vmem>>, vector<64x4xf32>
    %cst_114 = arith.constant dense<0.000000e+00> : vector<8x4xf32>
    %457 = tpu.matmul %455, %456, %cst_114 {dimension_numbers = #tpu.dot_dimension_numbers<[1], [0], [0], [1], [0, 0, 1, 1], [], []>} : vector<8x64xf32>, vector<64x4xf32>, vector<8x4xf32> -> vector<8x4xf32>
    %c648 = arith.constant 648 : index
    %c0_115 = arith.constant 0 : index
    %458 = vector.load %arg1[%c648, %c0_115] : memref<656x128xf32, #tpu.memory_space<vmem>>, vector<1x4xf32>
    %459 = vector.broadcast %458 : vector<1x4xf32> to vector<8x4xf32>
    %460 = arith.addf %457, %459 : vector<8x4xf32>
    %461 = vector.extract_strided_slice %460 {offsets = [0, 0], sizes = [8, 3], strides = [1, 1]} : vector<8x4xf32> to vector<8x3xf32>
    %462 = math.absf %461 : vector<8x3xf32>
    %cst_116 = arith.constant 1.000000e+00 : f32
    %463 = vector.broadcast %cst_116 : f32 to vector<8x3xf32>
    %464 = arith.addf %463, %462 : vector<8x3xf32>
    %465 = arith.divf %461, %464 : vector<8x3xf32>
    %466 = vector.extract_strided_slice %460 {offsets = [0, 3], sizes = [8, 1], strides = [1, 1]} : vector<8x4xf32> to vector<8x1xf32>
    %467 = vector.extract_strided_slice %465 {offsets = [0, 0], sizes = [4, 3], strides = [1, 1]} : vector<8x3xf32> to vector<4x3xf32>
    %468 = vector.shape_cast %467 : vector<4x3xf32> to vector<1x4x3xf32>
    %cst_117 = arith.constant dense<0x7F800000> : vector<1xf32>
    %469 = vector.multi_reduction <minimumf>, %468, %cst_117 [1, 2] : vector<1x4x3xf32> to vector<1xf32>
    %470 = vector.shape_cast %469 : vector<1xf32> to vector<1x1x1xf32>
    %471 = vector.extract %470[0, 0, 0] : f32 from vector<1x1x1xf32>
    %472 = vector.shape_cast %467 : vector<4x3xf32> to vector<1x4x3xf32>
    %cst_118 = arith.constant dense<0xFF800000> : vector<1xf32>
    %473 = vector.multi_reduction <maximumf>, %472, %cst_118 [1, 2] : vector<1x4x3xf32> to vector<1xf32>
    %474 = vector.shape_cast %473 : vector<1xf32> to vector<1x1x1xf32>
    %475 = vector.extract %474[0, 0, 0] : f32 from vector<1x1x1xf32>
    %476 = vector.shape_cast %467 : vector<4x3xf32> to vector<1x4x3xf32>
    %cst_119 = arith.constant dense<0.000000e+00> : vector<1xf32>
    %477 = vector.multi_reduction <add>, %476, %cst_119 [1, 2] : vector<1x4x3xf32> to vector<1xf32>
    %478 = vector.shape_cast %477 : vector<1xf32> to vector<1x1x1xf32>
    %479 = vector.extract %478[0, 0, 0] : f32 from vector<1x1x1xf32>
    %cst_120 = arith.constant 1.200000e+01 : f32
    %480 = arith.divf %479, %cst_120 : f32
    %481 = vector.broadcast %480 : f32 to vector<4x3xf32>
    %482 = arith.subf %467, %481 : vector<4x3xf32>
    %483 = arith.mulf %482, %482 : vector<4x3xf32>
    %484 = vector.shape_cast %483 : vector<4x3xf32> to vector<1x4x3xf32>
    %cst_121 = arith.constant dense<0.000000e+00> : vector<1xf32>
    %485 = vector.multi_reduction <add>, %484, %cst_121 [1, 2] : vector<1x4x3xf32> to vector<1xf32>
    %486 = vector.shape_cast %485 : vector<1xf32> to vector<1x1x1xf32>
    %487 = vector.extract %486[0, 0, 0] : f32 from vector<1x1x1xf32>
    %cst_122 = arith.constant 1.100000e+01 : f32
    %488 = arith.divf %487, %cst_122 : f32
    %489 = math.sqrt %488 : f32
    %490 = vector.broadcast %471 : f32 to vector<8x3xf32>
    %491 = arith.subf %465, %490 : vector<8x3xf32>
    %cst_123 = arith.constant 1.000000e+01 : f32
    %492 = arith.divf %489, %cst_123 : f32
    %493 = vector.broadcast %492 : f32 to vector<8x3xf32>
    %494 = arith.addf %491, %493 : vector<8x3xf32>
    %495 = arith.subf %475, %471 : f32
    %496 = vector.broadcast %495 : f32 to vector<8x3xf32>
    %497 = arith.divf %494, %496 : vector<8x3xf32>
    %cst_124 = arith.constant dense<0.000000e+00> : vector<8xf32>
    %498 = vector.multi_reduction <add>, %497, %cst_124 [1] : vector<8x3xf32> to vector<8xf32>
    %499 = vector.shape_cast %498 : vector<8xf32> to vector<8x1xf32>
    %500 = vector.broadcast %499 : vector<8x1xf32> to vector<8x3xf32>
    %501 = arith.divf %497, %500 : vector<8x3xf32>
    %cst_125 = arith.constant 0.000000e+00 : f32
    %502 = vector.broadcast %cst_125 : f32 to vector<8x128xf32>
    %c0_126 = arith.constant 0 : index
    %c0_127 = arith.constant 0 : index
    %503 = vector.load %arg2[%c0_126, %c0_127] : memref<8x128xf32, #tpu.memory_space<vmem>>, vector<8x128xf32>
    tpu.vector_store %arg2[%c0_126, %c0_127], %502 {strides = array<i32>} : memref<8x128xf32, #tpu.memory_space<vmem>>, vector<8x128xf32>,
    %c0_128 = arith.constant 0 : index
    %c0_129 = arith.constant 0 : index
    %504 = vector.load %arg2[%c0_128, %c0_129] : memref<8x128xf32, #tpu.memory_space<vmem>>, vector<8x3xf32>
    tpu.vector_store %arg2[%c0_128, %c0_129], %501 {strides = array<i32>} : memref<8x128xf32, #tpu.memory_space<vmem>>, vector<8x3xf32>,
    %c0_130 = arith.constant 0 : index
    %c3 = arith.constant 3 : index
    %505 = vector.load %arg2[%c0_130, %c3] : memref<8x128xf32, #tpu.memory_space<vmem>>, vector<8x1xf32>
    tpu.vector_store %arg2[%c0_130, %c3], %466 {strides = array<i32>} : memref<8x128xf32, #tpu.memory_space<vmem>>, vector<8x1xf32>,
    %c0_131 = arith.constant 0 : index
    %c4 = arith.constant 4 : index
    %506 = vector.load %arg2[%c0_131, %c4] : memref<8x128xf32, #tpu.memory_space<vmem>>, vector<8x4xf32>
    tpu.vector_store %arg2[%c0_131, %c4], %343 {strides = array<i32>} : memref<8x128xf32, #tpu.memory_space<vmem>>, vector<8x4xf32>,
    return
  }
}

</mosaic_0001>

<bundles_post_ra>
// kernel: forward.1
= control target key start
LH: loop header
LB: loop body
LE: loop exit
PB: predicated region body
PF: predicated region fallthrough
CT: control target
= control target key end

     0   :  { %7 = vsyncpa [#allocation3], 0  ;;  %s2791_s9 = smov [#allocation2]   ;;  %s3192_s0 = inlined_call_operand.vmem [shape: f32[64,8], index: 0, kind: input, shape index: {}]   ;;  %s3193_s1 = inlined_call_operand.hbm [shape: f32[656,128], index: 1, kind: input, shape index: {}]   ;;  %s3194_s2 = inlined_call_operand.vmem [shape: f32[8,128], index: 2, kind: output, shape index: {}]  }
   0x1   :  { %s15_s10 = sshll.u32 %s2791_s9, 4  ;;  %s16_s10 = int_to_ptr.vmem [resolvable:$true] %s15_s10 }
   0x2   :  { %s2777_s11 = scalar_lea.vmem %s16_s10, 10496  ;;  %p2782_p1 = scmp.lt.s32.totalorder %s16_s10, %s16_s10 }
   0x3   :  { %p2778_p0 = scmp.ne.s32.totalorder %s16_s10, %s2777_s11  ;;  %p2783_p2 = scmp.lt.s32.totalorder %s2777_s11, %s2777_s11 }
   0x5   :  { %p2784_p3 = por %p2783_p2, %p2782_p1 }
   0x7   :  { %p2785_p4 = pnand %p2784_p3, %p2778_p0 }
   0x9   :  { %2788 = shalt.err (!%p2785_p4)
}
   0xa   :  { %s2792_s12 = smov 128   ;;  %s2793_s13 = smov 8  }
   0xb   :  { %21 = dma.hbm_to_vmem [thread:$0]  %s3193_s1, 10496, %s16_s10, [#allocation3], %s2792_s12, %s2792_s12, %s2793_s13  }
   0xc   :  { %2789 = dma.done.wait [#allocation3], 10496  }
   0xd   :  { %2790 = vsyncadd [#allocation3], 4294956800  ;;  %vm51_vm0 = vcmask 64512   ;;  %v25_v0 = vld [vmem:[#allocation2] sm:$0xff]  ;;  %v40_v2 = vld [vmem:[%s3192_s0 + $0x8] sm:$0xff]  ;;  %s2794_s1 = smov 32  }
   0xe   :  { %v2822_v1 = vld [vmem:[%s3192_s0] sm:$0xff]  ;;  %2428 = vmatprep.subr.mxu0 %v25_v0  ;;  %2658 = vmatprep.subr.mxu1 %v25_v0  ;;  %v2832_v4 = vld [vmem:[#allocation2 + $0x18] ss:$0 sm:$0xff]  ;;  %v44_v16 = vld [vmem:[%s3192_s0 + $0x28] sm:$0xff]  ;;  %v2795_v18 = vmov 0.0   ;;  %vm2796_vm1 = vmmov 0  }
   0xf   :  { %2430 = vmatprep.mubr.msk.f32.mxu0 %vm51_vm0, %v2822_v1  ;;  %2429 = vmatpush3.msra.mxu0 %v25_v0  ;;  %v2264_v10 = vld [vmem:[#allocation2 + $0x20] ss:$0 sm:$0xff]  ;;  %v2842_v17 = vld [vmem:[#allocation2 + $0x10] sm:$0xff]  ;;  %2250 = vst [vmem:[%s3194_s2] sm:$0xff] %v2795_v18  ;;  %v2854_v20 = vld [vmem:[#allocation2 + $0x8] sm:$0xff]  ;;  %s2797_s30 = smov 112   ;;  %vm209_vm2 = vcmask 130048  }
  0x10   :  { %2431 = vmatmul.mubr.msk.f32.vlgmr.msra.gmra.mxu0 %vm51_vm0, %v40_v2  ;;  %2659 = vmatpush3.msra.mxu1 %v25_v0  ;;  %v43_v15 = vld [vmem:[%s3192_s0 + $0x20] sm:$0xff]  ;;  %v45_v19 = vld [vmem:[%s3192_s0 + $0x30] sm:$0xff]  ;;  %v46_v21 = vld [vmem:[%s3192_s0 + $0x38] sm:$0xff]  ;;  %s2798_s3 = smov 96   ;;  %vm1097_vm3 = vcmask 261120   ;;  %vm1529_vm4 = vcmask 1043456  }
  0x11   :  { %2436 = vmatprep.mubr.msk.f32.mxu1 %vm51_vm0, %v43_v15  ;;  %2442 = vmatprep.subr.mxu1 %v2795_v18  ;;  %v41_v45 = vld [vmem:[%s3192_s0 + $0x10] sm:$0xff]  ;;  %v42_v46 = vld [vmem:[%s3192_s0 + $0x18] sm:$0xff]  ;;  %s2799_s0 = smov 16   ;;  %vm1525_vm5 = vcmask 31744   ;;  %vm1704_vm8 = vcmask 523264   ;;  %vm2174_vm13 = vcmask 19456  }
  0x12   :  { %2437 = vmatmul.mubr.msk.f32.vlgmr.msra.gmra.mxu1 %vm51_vm0, %v44_v16  ;;  %2470 = vmatprep.subr.mxu0 %v2795_v18  ;;  %s2800_s15 = smov 4  }
  0x13   :  { %2443 = vmatpush3.msra.mxu1 %v2842_v17  ;;  %2439 = vmatprep.mubr.msk.f32.mxu1 %vm51_vm0, %v45_v19 }
  0x14   :  { %2444 = vmatprep.subr.mxu1 %v2795_v18  ;;  %2471 = vmatpush3.msra.mxu0 %v2842_v17 }
  0x15   :  { %2445 = vmatpush3.msra.mxu1 %v2854_v20  ;;  %2472 = vmatprep.subr.mxu0 %v2795_v18 }
  0x16   :  { %2440 = vmatmul.mubr.msk.f32.gmra.mxu1 %vm51_vm0, %v46_v21  ;;  %2449 = vmatprep.subr.mxu1 %v2795_v18 }
  0x17   :  { %2446 = vmatprep.mubr.msk.f32.mxu1 %vm2796_vm1, %v2795_v18  ;;  %2473 = vmatpush3.msra.mxu0 %v2854_v20 }
  0x18   :  { %2484 = vmatprep.subr.mxu0 %v2795_v18  ;;  %2433 = vmatprep.mubr.msk.f32.mxu0 %vm51_vm0, %v41_v45 }
  0x19   :  { %2434 = vmatmul.mubr.msk.f32.gmra.mxu0 %vm51_vm0, %v42_v46 }
  0x1a   :  { %2474 = vmatprep.mubr.msk.f32.mxu0 %vm2796_vm1, %v2795_v18 }
  0xd0   :  { %v2830_v3 = vpop.f32.mrf.mxu0 }
  0xd1   :  { %v148_v35 = vadd.f32 %v2830_v3, %v2832_v4 }
  0xd2   :  { %v142_v5 = vpop.f32.mrf.mxu0  ;;  %v2885_v27 = vpop.f32.mrf.mxu1 }
  0xd3   :  { %v143_v6 = vadd.f32 %v2832_v4, %v142_v5 }
  0xd4   :  { %v2887_v28 = vpop.f32.mrf.mxu1 }
  0xd5   :  { %v2275_v7 = vmul.f32 -1.442695, %v143_v6  ;;  %v163_v46 = vadd.f32 %v2832_v4, %v2887_v28 }
  0xd6   :  { %v2889_v29 = vpop.f32.mrf.mxu1 }
  0xd7   :  { %2680 = vpow2.f32 %v2275_v7 }
  0xd8   :  { %v2891_v30 = vpop.f32.mrf.mxu1 }
  0xd9   :  { %v2435_v57 = vpop.f32.mrf.mxu0 }
  0xda   :  { %v158_v19 = vadd.f32 %v2435_v57, %v2832_v4 }
  0xdb   :  { %v152_v58 = vpop.f32.mrf.mxu0 }
  0xdc   :  { %v153_v59 = vadd.f32 %v2832_v4, %v152_v58 }
  0xe4   :  { %v2681_v8 = vpop.eup %2680 }
  0xe5   :  { %v184_v9 = vadd.f32 1.0, %v2681_v8 }
  0xe7   :  { %2682 = vrcp.f32 %v184_v9 }
  0xf4   :  { %v2683_v11 = vpop.eup %2682 }
  0xf5   :  { %v187_v12 = vmul.f32 %v2683_v11, %v2264_v10  ;;  %v194_v23 = vsub.f32 1.0, %v2683_v11 }
  0xf7   :  { %189 = vrot.lane.b32.xlu0 %v187_v12, %s2794_s1 }
 0x169   :  { %v190_v13 = vpop.permute.xlu0 %189 }
 0x16a   :  { %v192_v14 = vadd.f32 %v190_v13, %v143_v6 }
 0x16c   :  { %2684 = vtanh.f32 %v192_v14 }
 0x179   :  { %v2685_v22 = vpop.eup %2684 }
 0x17a   :  { %196 = vrot.lane.b32.xlu0 %v2685_v22, %s2797_s30 }
 0x1ec   :  { %v197_v24 = vpop.permute.xlu0 %196 }
 0x1ed   :  { %v2873_v25 = vmul.f32 %v197_v24, %v194_v23 }
 0x1ef   :  { %215 = vrot.lane.b32.xlu1 %v2873_v25, %s2797_s30 }
 0x1f3   :  { %297 = vrot.lane.b32.xlu1 %v2264_v10, %s2794_s1 }
 0x261   :  { %v216_v26 = vpop.permute.xlu1 %215 }
 0x262   :  { %2447 = vmatmul.mubr.msk.f32.vlgmr.msra.gmra.mxu1 %vm209_vm2, %v216_v26 }
 0x263   :  { %2450 = vmatpush3.msra.mxu1 %v2842_v17  ;;  %2453 = vmatprep.mubr.msk.f32.mxu1 %vm2796_vm1, %v2795_v18 }
 0x264   :  { %2451 = vmatprep.subr.mxu1 %v2795_v18 }
 0x265   :  { %2452 = vmatpush3.msra.mxu1 %v2854_v20  ;;  %v2893_v31 = vpop.permute.xlu1 %297 }
 0x266   :  { %2456 = vmatprep.subr.mxu1 %v2795_v18 }
 0x322   :  { %v285_v32 = vpop.f32.mrf.mxu1 }
 0x323   :  { %v300_v33 = vadd.f32 %v2893_v31, %v285_v32  ;;  %v289_v36 = vadd.f32 %v285_v32, %v148_v35 }
 0x324   :  { %v2448_v34 = vpop.f32.mrf.mxu1 }
 0x325   :  { %302 = vrot.lane.b32.xlu0 %v300_v33, %s2798_s3  ;;  %v2277_v37 = vmul.f32 -1.442695, %v289_v36 }
 0x327   :  { %2686 = vpow2.f32 %v2277_v37 }
 0x334   :  { %v2687_v38 = vpop.eup %2686 }
 0x335   :  { %v293_v39 = vadd.f32 1.0, %v2687_v38 }
 0x337   :  { %2688 = vrcp.f32 %v293_v39 }
 0x344   :  { %v2689_v40 = vpop.eup %2688 }
 0x345   :  { %v312_v48 = vsub.f32 1.0, %v2689_v40  ;;  %v318_v50 = vmul.f32 %v2689_v40, %v2873_v25 }
 0x397   :  { %v303_v41 = vpop.permute.xlu0 %302 }
 0x398   :  { %v305_v42 = vmul.f32 %v2689_v40, %v303_v41 }
 0x39a   :  { %307 = vrot.lane.b32.xlu1 %v305_v42, %s2794_s1 }
 0x40c   :  { %v308_v43 = vpop.permute.xlu1 %307 }
 0x40d   :  { %v310_v44 = vadd.f32 %v308_v43, %v148_v35 }
 0x40f   :  { %2690 = vtanh.f32 %v310_v44 }
 0x41c   :  { %v2691_v47 = vpop.eup %2690 }
 0x41d   :  { %314 = vrot.lane.b32.xlu0 %v2691_v47, %s2797_s30 }
 0x48f   :  { %v315_v49 = vpop.permute.xlu0 %314 }
 0x490   :  { %v317_v51 = vmul.f32 %v315_v49, %v312_v48 }
 0x492   :  { %v2912_v52 = vadd.f32 %v318_v50, %v317_v51 }
 0x494   :  { %331 = vrot.lane.b32.xlu1 %v2912_v52, %s2797_s30 }
 0x506   :  { %v332_v53 = vpop.permute.xlu1 %331 }
 0x507   :  { %2454 = vmatmul.mubr.msk.f32.vlgmr.msra.gmra.mxu1 %vm209_vm2, %v332_v53 }
 0x508   :  { %2457 = vmatpush3.msra.mxu1 %v2842_v17  ;;  %2460 = vmatprep.mubr.msk.f32.mxu1 %vm2796_vm1, %v2795_v18 }
 0x509   :  { %2458 = vmatprep.subr.mxu1 %v2795_v18 }
 0x50a   :  { %2459 = vmatpush3.msra.mxu1 %v2854_v20 }
 0x50b   :  { %2463 = vmatprep.subr.mxu1 %v2795_v18 }
 0x5c7   :  { %v401_v54 = vpop.f32.mrf.mxu1 }
 0x5c8   :  { %v412_v55 = vadd.f32 %v401_v54, %v2893_v31  ;;  %v405_v60 = vadd.f32 %v401_v54, %v153_v59 }
 0x5c9   :  { %v2455_v56 = vpop.f32.mrf.mxu1 }
 0x5ca   :  { %414 = vrot.lane.b32.xlu0 %v412_v55, %s2798_s3  ;;  %v2279_v61 = vmul.f32 -1.442695, %v405_v60 }
 0x5cc   :  { %2692 = vpow2.f32 %v2279_v61 }
 0x5d9   :  { %v2693_v62 = vpop.eup %2692 }
 0x5da   :  { %v409_v63 = vadd.f32 1.0, %v2693_v62 }
 0x5dc   :  { %2694 = vrcp.f32 %v409_v63 }
 0x5e9   :  { %v2695_v0 = vpop.eup %2694 }
 0x5ea   :  { %v424_v8 = vsub.f32 1.0, %v2695_v0  ;;  %v430_v10 = vmul.f32 %v2695_v0, %v2912_v52 }
 0x63c   :  { %v415_v2 = vpop.permute.xlu0 %414 }
 0x63d   :  { %v417_v3 = vmul.f32 %v2695_v0, %v415_v2 }
 0x63f   :  { %419 = vrot.lane.b32.xlu1 %v417_v3, %s2794_s1  ;;  %v168_v3 = vadd.f32 %v2885_v27, %v2832_v4 }
 0x6b1   :  { %v420_v5 = vpop.permute.xlu1 %419 }
 0x6b2   :  { %v422_v6 = vadd.f32 %v420_v5, %v153_v59 }
 0x6b4   :  { %2696 = vtanh.f32 %v422_v6 }
 0x6c1   :  { %v2697_v7 = vpop.eup %2696 }
 0x6c2   :  { %426 = vrot.lane.b32.xlu0 %v2697_v7, %s2797_s30 }
 0x734   :  { %v427_v9 = vpop.permute.xlu0 %426 }
 0x735   :  { %v429_v11 = vmul.f32 %v427_v9, %v424_v8 }
 0x737   :  { %v2929_v12 = vadd.f32 %v430_v10, %v429_v11 }
 0x739   :  { %443 = vrot.lane.b32.xlu1 %v2929_v12, %s2797_s30 }
 0x7ab   :  { %v444_v13 = vpop.permute.xlu1 %443 }
 0x7ac   :  { %2461 = vmatmul.mubr.msk.f32.vlgmr.msra.gmra.mxu1 %vm209_vm2, %v444_v13 }
 0x7ad   :  { %2464 = vmatpush3.msra.mxu1 %v2842_v17  ;;  %2467 = vmatprep.mubr.msk.f32.mxu1 %vm2796_vm1, %v2795_v18 }
 0x7ae   :  { %2465 = vmatprep.subr.mxu1 %v2795_v18 }
 0x7af   :  { %2466 = vmatpush3.msra.mxu1 %v2854_v20 }
 0x7b0   :  { %2477 = vmatprep.subr.mxu1 %v2795_v18 }
 0x86c   :  { %v513_v14 = vpop.f32.mrf.mxu1 }
 0x86d   :  { %v524_v15 = vadd.f32 %v513_v14, %v2893_v31  ;;  %v517_v21 = vadd.f32 %v513_v14, %v158_v19 }
 0x86e   :  { %v2462_v16 = vpop.f32.mrf.mxu1 }
 0x86f   :  { %526 = vrot.lane.b32.xlu0 %v524_v15, %s2798_s3  ;;  %v2281_v22 = vmul.f32 -1.442695, %v517_v21 }
 0x871   :  { %2698 = vpow2.f32 %v2281_v22 }
 0x87e   :  { %v2699_v23 = vpop.eup %2698 }
 0x87f   :  { %v521_v24 = vadd.f32 1.0, %v2699_v23 }
 0x881   :  { %2700 = vrcp.f32 %v521_v24 }
 0x88e   :  { %v2701_v26 = vpop.eup %2700 }
 0x88f   :  { %v536_v37 = vsub.f32 1.0, %v2701_v26  ;;  %v542_v39 = vmul.f32 %v2701_v26, %v2929_v12 }
 0x8e1   :  { %v527_v32 = vpop.permute.xlu0 %526 }
 0x8e2   :  { %v529_v33 = vmul.f32 %v2701_v26, %v527_v32  ;;  %v173_v26 = vadd.f32 %v2832_v4, %v2891_v30 }
 0x8e4   :  { %531 = vrot.lane.b32.xlu1 %v529_v33, %s2794_s1 }
 0x956   :  { %v532_v34 = vpop.permute.xlu1 %531 }
 0x957   :  { %v534_v35 = vadd.f32 %v532_v34, %v158_v19 }
 0x959   :  { %2702 = vtanh.f32 %v534_v35 }
 0x966   :  { %v2703_v36 = vpop.eup %2702 }
 0x967   :  { %538 = vrot.lane.b32.xlu0 %v2703_v36, %s2797_s30 }
 0x9d9   :  { %v539_v38 = vpop.permute.xlu0 %538 }
 0x9da   :  { %v541_v40 = vmul.f32 %v539_v38, %v536_v37 }
 0x9dc   :  { %v2946_v41 = vadd.f32 %v542_v39, %v541_v40 }
 0x9de   :  { %555 = vrot.lane.b32.xlu1 %v2946_v41, %s2797_s30 }
 0xa50   :  { %v556_v42 = vpop.permute.xlu1 %555 }
 0xa51   :  { %2468 = vmatmul.mubr.msk.f32.vlgmr.msra.gmra.mxu1 %vm209_vm2, %v556_v42 }
 0xa52   :  { %2478 = vmatpush3.msra.mxu1 %v2842_v17  ;;  %2481 = vmatprep.mubr.msk.f32.mxu1 %vm2796_vm1, %v2795_v18 }
 0xa53   :  { %2479 = vmatprep.subr.mxu1 %v2795_v18 }
 0xa54   :  { %2480 = vmatpush3.msra.mxu1 %v2854_v20 }
 0xa55   :  { %2491 = vmatprep.subr.mxu1 %v2795_v18 }
 0xb11   :  { %v625_v43 = vpop.f32.mrf.mxu1 }
 0xb12   :  { %v636_v44 = vadd.f32 %v625_v43, %v2893_v31  ;;  %v629_v47 = vadd.f32 %v625_v43, %v163_v46 }
 0xb13   :  { %v2469_v45 = vpop.f32.mrf.mxu1 }
 0xb14   :  { %638 = vrot.lane.b32.xlu0 %v636_v44, %s2798_s3  ;;  %v2283_v48 = vmul.f32 -1.442695, %v629_v47 }
 0xb16   :  { %2704 = vpow2.f32 %v2283_v48 }
 0xb23   :  { %v2705_v49 = vpop.eup %2704 }
 0xb24   :  { %v633_v50 = vadd.f32 1.0, %v2705_v49 }
 0xb26   :  { %2706 = vrcp.f32 %v633_v50 }
 0xb33   :  { %v2707_v51 = vpop.eup %2706 }
 0xb34   :  { %v648_v58 = vsub.f32 1.0, %v2707_v51  ;;  %v654_v28 = vmul.f32 %v2707_v51, %v2946_v41 }
 0xb86   :  { %v639_v53 = vpop.permute.xlu0 %638 }
 0xb87   :  { %v641_v54 = vmul.f32 %v2707_v51, %v639_v53  ;;  %v2265_v51 = vld [vmem:[#allocation2 + $0x28] ss:$0 sm:$0xff]  ;;  %v178_v53 = vadd.f32 %v2889_v29, %v2832_v4 }
 0xb89   :  { %643 = vrot.lane.b32.xlu1 %v641_v54, %s2794_s1 }
 0xbfb   :  { %v644_v55 = vpop.permute.xlu1 %643 }
 0xbfc   :  { %v646_v56 = vadd.f32 %v644_v55, %v163_v46 }
 0xbfe   :  { %2708 = vtanh.f32 %v646_v56 }
 0xc0b   :  { %v2709_v57 = vpop.eup %2708 }
 0xc0c   :  { %650 = vrot.lane.b32.xlu0 %v2709_v57, %s2797_s30 }
 0xc7e   :  { %v651_v59 = vpop.permute.xlu0 %650 }
 0xc7f   :  { %v653_v60 = vmul.f32 %v651_v59, %v648_v58 }
 0xc81   :  { %v2964_v61 = vadd.f32 %v654_v28, %v653_v60 }
 0xc83   :  { %667 = vrot.lane.b32.xlu1 %v2964_v61, %s2797_s30 }
 0xcf5   :  { %v668_v62 = vpop.permute.xlu1 %667 }
 0xcf6   :  { %2475 = vmatmul.mubr.msk.f32.vlgmr.msra.gmra.mxu0 %vm209_vm2, %v668_v62 }
 0xcf7   :  { %2485 = vmatpush3.msra.mxu0 %v2842_v17  ;;  %2488 = vmatprep.mubr.msk.f32.mxu0 %vm2796_vm1, %v2795_v18 }
 0xcf8   :  { %2486 = vmatprep.subr.mxu0 %v2795_v18 }
 0xcf9   :  { %2487 = vmatpush3.msra.mxu0 %v2854_v20 }
 0xcfa   :  { %2498 = vmatprep.subr.mxu0 %v2795_v18 }
 0xdb6   :  { %v737_v63 = vpop.f32.mrf.mxu0 }
 0xdb7   :  { %v748_v0 = vadd.f32 %v737_v63, %v2893_v31  ;;  %v741_v5 = vadd.f32 %v737_v63, %v168_v3 }
 0xdb8   :  { %v2476_v2 = vpop.f32.mrf.mxu0 }
 0xdb9   :  { %750 = vrot.lane.b32.xlu0 %v748_v0, %s2798_s3  ;;  %v2285_v17 = vmul.f32 -1.442695, %v741_v5 }
 0xdbb   :  { %2710 = vpow2.f32 %v2285_v17 }
 0xdc8   :  { %v2711_v6 = vpop.eup %2710 }
 0xdc9   :  { %v745_v7 = vadd.f32 1.0, %v2711_v6 }
 0xdcb   :  { %2712 = vrcp.f32 %v745_v7 }
 0xdd8   :  { %v2713_v8 = vpop.eup %2712 }
 0xdd9   :  { %v760_v14 = vsub.f32 1.0, %v2713_v8  ;;  %v766_v27 = vmul.f32 %v2713_v8, %v2964_v61 }
 0xe2b   :  { %v751_v9 = vpop.permute.xlu0 %750 }
 0xe2c   :  { %v753_v20 = vmul.f32 %v2713_v8, %v751_v9 }
 0xe2e   :  { %755 = vrot.lane.b32.xlu1 %v753_v20, %s2794_s1 }
 0xea0   :  { %v756_v10 = vpop.permute.xlu1 %755 }
 0xea1   :  { %v758_v11 = vadd.f32 %v756_v10, %v168_v3 }
 0xea3   :  { %2714 = vtanh.f32 %v758_v11 }
 0xeb0   :  { %v2715_v13 = vpop.eup %2714 }
 0xeb1   :  { %762 = vrot.lane.b32.xlu0 %v2715_v13, %s2797_s30 }
 0xf23   :  { %v763_v15 = vpop.permute.xlu0 %762 }
 0xf24   :  { %v765_v16 = vmul.f32 %v763_v15, %v760_v14 }
 0xf26   :  { %v2982_v19 = vadd.f32 %v766_v27, %v765_v16 }
 0xf28   :  { %779 = vrot.lane.b32.xlu1 %v2982_v19, %s2797_s30 }
 0xf9a   :  { %v780_v21 = vpop.permute.xlu1 %779 }
 0xf9b   :  { %2482 = vmatmul.mubr.msk.f32.vlgmr.msra.gmra.mxu1 %vm209_vm2, %v780_v21 }
 0xf9c   :  { %2495 = vmatprep.mubr.msk.f32.mxu1 %vm2796_vm1, %v2795_v18 }
0x105b   :  { %v849_v22 = vpop.f32.mrf.mxu1 }
0x105c   :  { %v860_v23 = vadd.f32 %v849_v22, %v2893_v31  ;;  %v853_v32 = vadd.f32 %v849_v22, %v173_v26 }
0x105d   :  { %v2483_v24 = vpop.f32.mrf.mxu1 }
0x105e   :  { %862 = vrot.lane.b32.xlu0 %v860_v23, %s2798_s3  ;;  %v2287_v33 = vmul.f32 -1.442695, %v853_v32 }
0x1060   :  { %2716 = vpow2.f32 %v2287_v33 }
0x106d   :  { %v2717_v34 = vpop.eup %2716 }
0x106e   :  { %v857_v35 = vadd.f32 1.0, %v2717_v34 }
0x1070   :  { %2718 = vrcp.f32 %v857_v35 }
0x107d   :  { %v2719_v36 = vpop.eup %2718 }
0x107e   :  { %v872_v43 = vsub.f32 1.0, %v2719_v36  ;;  %v878_v30 = vmul.f32 %v2719_v36, %v2982_v19 }
0x10d0   :  { %v863_v37 = vpop.permute.xlu0 %862 }
0x10d1   :  { %v865_v38 = vmul.f32 %v2719_v36, %v863_v37  ;;  %v1003_v37 = vld [vmem:[#allocation2 + $0x38] sm:$0xff] }
0x10d2   :  { %2492 = vmatpush3.msra.mxu1 %v1003_v37  ;;  %v1350_v37 = vld [vmem:[#allocation2 + $0xd8] sm:$0xff] }
0x10d3   :  { %867 = vrot.lane.b32.xlu1 %v865_v38, %s2794_s1  ;;  %v1002_v38 = vld [vmem:[#allocation2 + $0x30] sm:$0xff]  ;;  %2493 = vmatprep.subr.mxu1 %v2795_v18 }
0x10d4   :  { %2494 = vmatpush3.msra.mxu1 %v1002_v38  ;;  %v1349_v38 = vld [vmem:[#allocation2 + $0xd0] sm:$0xff] }
0x10d5   :  { %2509 = vmatprep.subr.mxu1 %v2795_v18 }
0x1145   :  { %v868_v39 = vpop.permute.xlu1 %867 }
0x1146   :  { %v870_v40 = vadd.f32 %v868_v39, %v173_v26 }
0x1148   :  { %2720 = vtanh.f32 %v870_v40 }
0x1155   :  { %v2721_v42 = vpop.eup %2720 }
0x1156   :  { %874 = vrot.lane.b32.xlu0 %v2721_v42, %s2797_s30 }
0x11c8   :  { %v875_v44 = vpop.permute.xlu0 %874 }
0x11c9   :  { %v877_v45 = vmul.f32 %v875_v44, %v872_v43 }
0x11cb   :  { %v2996_v46 = vadd.f32 %v878_v30, %v877_v45 }
0x11cd   :  { %891 = vrot.lane.b32.xlu1 %v2996_v46, %s2797_s30 }
0x123f   :  { %v892_v47 = vpop.permute.xlu1 %891 }
0x1240   :  { %2489 = vmatmul.mubr.msk.f32.vlgmr.msra.gmra.mxu0 %vm209_vm2, %v892_v47 }
0x1241   :  { %2506 = vmatprep.mubr.msk.f32.mxu0 %vm2796_vm1, %v2795_v18 }
0x1300   :  { %v961_v48 = vpop.f32.mrf.mxu0 }
0x1301   :  { %v972_v49 = vadd.f32 %v961_v48, %v2893_v31  ;;  %v965_v54 = vadd.f32 %v961_v48, %v178_v53 }
0x1302   :  { %v2490_v50 = vpop.f32.mrf.mxu0 }
0x1303   :  { %974 = vrot.lane.b32.xlu0 %v972_v49, %s2798_s3  ;;  %v2289_v55 = vmul.f32 -1.442695, %v965_v54 }
0x1305   :  { %2722 = vpow2.f32 %v2289_v55 }
0x1307   :  { %201 = vrot.lane.b32.xlu0 %v2265_v51, %s2799_s0 }
0x1312   :  { %v2723_v56 = vpop.eup %2722 }
0x1313   :  { %v969_v57 = vadd.f32 1.0, %v2723_v56 }
0x1315   :  { %2724 = vrcp.f32 %v969_v57 }
0x1322   :  { %v2725_v58 = vpop.eup %2724 }
0x1323   :  { %v984_v20 = vsub.f32 1.0, %v2725_v58  ;;  %v990_v11 = vmul.f32 %v2725_v58, %v2996_v46 }
0x1375   :  { %v975_v59 = vpop.permute.xlu0 %974 }
0x1376   :  { %v977_v28 = vmul.f32 %v2725_v58, %v975_v59 }
0x1378   :  { %979 = vrot.lane.b32.xlu1 %v977_v28, %s2794_s1 }
0x1379   :  { %v202_v31 = vpop.permute.xlu0 %201 }
0x137a   :  { %v204_v60 = vmul.f32 %v202_v31, %v2873_v25  ;;  %v432_v62 = vmul.f32 %v2929_v12, %v202_v31  ;;  %v656_v4 = vmul.f32 %v2964_v61, %v202_v31  ;;  %v880_v29 = vmul.f32 %v2996_v46, %v202_v31 }
0x137b   :  { %v320_v7 = vmul.f32 %v2912_v52, %v202_v31  ;;  %v544_v8 = vmul.f32 %v2946_v41, %v202_v31  ;;  %v768_v9 = vmul.f32 %v2982_v19, %v202_v31 }
0x137c   :  { %206 = vrot.lane.b32.xlu0 %v204_v60, %s2797_s30  ;;  %v2290_v60 = vld [vmem:[#allocation2 + $0x40] ss:$0 sm:$0xff] }
0x1380   :  { %434 = vrot.lane.b32.xlu0 %v432_v62, %s2797_s30 }
0x1384   :  { %658 = vrot.lane.b32.xlu0 %v656_v4, %s2797_s30 }
0x1388   :  { %882 = vrot.lane.b32.xlu0 %v880_v29, %s2797_s30 }
0x13ea   :  { %v980_v63 = vpop.permute.xlu1 %979 }
0x13eb   :  { %v982_v0 = vadd.f32 %v980_v63, %v178_v53 }
0x13ed   :  { %2726 = vtanh.f32 %v982_v0 }
0x13ee   :  { %v207_v2 = vpop.permute.xlu0 %206 }
0x13ef   :  { %v210_v3 = vsel %vm209_vm2, %v207_v2, 0.0 }
0x13f0   :  { %211 = vadd.xlane.f32.xlu0 %v210_v3 }
0x13f2   :  { %v435_v5 = vpop.permute.xlu0 %434 }
0x13f3   :  { %v437_v17 = vsel %vm209_vm2, %v435_v5, 0.0  ;;  %v1178_v5 = vld [vmem:[#allocation2 + $0x88] sm:$0xff] }
0x13f4   :  { %438 = vadd.xlane.f32.xlu0 %v437_v17  ;;  %v1177_v17 = vld [vmem:[#allocation2 + $0x80] sm:$0xff] }
0x13f6   :  { %v659_v24 = vpop.permute.xlu0 %658 }
0x13f7   :  { %v661_v32 = vsel %vm209_vm2, %v659_v24, 0.0 }
0x13fa   :  { %v2727_v6 = vpop.eup %2726  ;;  %v883_v33 = vpop.permute.xlu0 %882 }
0x13fb   :  { %986 = vrot.lane.b32.xlu1 %v2727_v6, %s2797_s30  ;;  %v885_v34 = vsel %vm209_vm2, %v883_v33, 0.0  ;;  %v1176_v6 = vld [vmem:[#allocation2 + $0x78] sm:$0xff] }
0x13ff   :  { %322 = vrot.lane.b32.xlu1 %v320_v7, %s2797_s30  ;;  %v1175_v7 = vld [vmem:[#allocation2 + $0x70] sm:$0xff] }
0x1403   :  { %546 = vrot.lane.b32.xlu1 %v544_v8, %s2797_s30  ;;  %v2292_v8 = vld [vmem:[#allocation2 + $0x68] ss:$0 sm:$0xff] }
0x1407   :  { %770 = vrot.lane.b32.xlu1 %v768_v9, %s2797_s30 }
0x146d   :  { %v987_v10 = vpop.permute.xlu1 %986 }
0x146e   :  { %v989_v13 = vmul.f32 %v987_v10, %v984_v20 }
0x1470   :  { %v991_v14 = vadd.f32 %v990_v11, %v989_v13 }
0x1471   :  { %v323_v15 = vpop.permute.xlu1 %322 }
0x1472   :  { %v992_v27 = vmul.f32 %v991_v14, %v202_v31  ;;  %v325_v26 = vsel %vm209_vm2, %v323_v15, 0.0 }
0x1474   :  { %994 = vrot.lane.b32.xlu1 %v992_v27, %s2797_s30  ;;  %v1264_v27 = vld [vmem:[#allocation2 + $0xb0] sm:$0xff] }
0x1475   :  { %v547_v16 = vpop.permute.xlu1 %546 }
0x1476   :  { %v549_v21 = vsel %vm209_vm2, %v547_v16, 0.0  ;;  %v1263_v16 = vld [vmem:[#allocation2 + $0xa8] sm:$0xff] }
0x1477   :  { %550 = vadd.xlane.f32.xlu0 %v549_v21  ;;  %v1262_v21 = vld [vmem:[#allocation2 + $0xa0] sm:$0xff] }
0x1479   :  { %v771_v22 = vpop.permute.xlu1 %770  ;;  %v212_v39 = vpop.xlane.xlu0 %211 }
0x147a   :  { %v773_v23 = vsel %vm209_vm2, %v771_v22, 0.0  ;;  %v213_v43 = vmul.f32 %v212_v39, %v2873_v25  ;;  %v1261_v22 = vld [vmem:[#allocation2 + $0x98] sm:$0xff]  ;;  %v1348_v39 = vld [vmem:[#allocation2 + $0xc8] sm:$0xff] }
0x147b   :  { %774 = vadd.xlane.f32.xlu0 %v773_v23  ;;  %v2294_v23 = vld [vmem:[#allocation2 + $0x90] ss:$0 sm:$0xff] }
0x147d   :  { %v439_v44 = vpop.xlane.xlu0 %438 }
0x147e   :  { %v440_v45 = vmul.f32 %v439_v44, %v2929_v12 }
0x1498   :  { %326 = vadd.xlane.f32.xlu1 %v325_v26 }
0x149c   :  { %662 = vadd.xlane.f32.xlu1 %v661_v32 }
0x14a0   :  { %886 = vadd.xlane.f32.xlu1 %v885_v34 }
0x14e6   :  { %v995_v35 = vpop.permute.xlu1 %994 }
0x14e7   :  { %v997_v36 = vsel %vm209_vm2, %v995_v35, 0.0 }
0x14e8   :  { %998 = vadd.xlane.f32.xlu0 %v997_v36 }
0x1500   :  { %v551_v47 = vpop.xlane.xlu0 %550 }
0x1501   :  { %v552_v49 = vmul.f32 %v551_v47, %v2946_v41  ;;  %v1091_v41 = vld [vmem:[#allocation2 + $0x60] sm:$0xff] }
0x1502   :  { %2499 = vmatpush3.msra.mxu0 %v1091_v41 }
0x1503   :  { %2500 = vmatprep.subr.mxu0 %v2795_v18 }
0x1504   :  { %v775_v54 = vpop.xlane.xlu0 %774 }
0x1505   :  { %v776_v56 = vmul.f32 %v775_v54, %v2982_v19  ;;  %v1089_v19 = vld [vmem:[#allocation2 + $0x50] sm:$0xff]  ;;  %v1433_v54 = vld [vmem:[#allocation2 + $0xe8] sm:$0xff] }
0x1521   :  { %v327_v40 = vpop.xlane.xlu1 %326 }
0x1522   :  { %v328_v42 = vmul.f32 %v327_v40, %v2912_v52  ;;  %v1347_v40 = vld [vmem:[#allocation2 + $0xc0] sm:$0xff] }
0x1524   :  { %v329_v30 = vadd.f32 %v328_v42, %v213_v43  ;;  %v2296_v42 = vld [vmem:[#allocation2 + $0xb8] ss:$0 sm:$0xff] }
0x1525   :  { %v663_v50 = vpop.xlane.xlu1 %662 }
0x1526   :  { %v441_v48 = vadd.f32 %v440_v45, %v329_v30  ;;  %v664_v53 = vmul.f32 %v663_v50, %v2964_v61  ;;  %v1090_v61 = vld [vmem:[#allocation2 + $0x58] sm:$0xff]  ;;  %v1436_v50 = vld [vmem:[#allocation2 + $0x100] sm:$0xff] }
0x1527   :  { %2501 = vmatpush3.msra.mxu0 %v1090_v61 }
0x1528   :  { %v553_v51 = vadd.f32 %v552_v49, %v441_v48  ;;  %2502 = vmatprep.subr.mxu0 %v2795_v18 }
0x1529   :  { %v887_v57 = vpop.xlane.xlu1 %886  ;;  %2503 = vmatpush3.msra.mxu0 %v1089_v19 }
0x152a   :  { %v665_v55 = vadd.f32 %v664_v53, %v553_v51  ;;  %v888_v25 = vmul.f32 %v887_v57, %v2996_v46  ;;  %v1088_v46 = vld [vmem:[#allocation2 + $0x48] sm:$0xff]  ;;  %2504 = vmatprep.subr.mxu0 %v2795_v18  ;;  %v1435_v51 = vld [vmem:[#allocation2 + $0xf8] sm:$0xff]  ;;  %v1434_v53 = vld [vmem:[#allocation2 + $0xf0] sm:$0xff] }
0x152b   :  { %2505 = vmatpush3.msra.mxu0 %v1088_v46 }
0x152c   :  { %v777_v52 = vadd.f32 %v776_v56, %v665_v55  ;;  %2520 = vmatprep.subr.mxu0 %v2795_v18  ;;  %v2298_v55 = vld [vmem:[#allocation2 + $0xe0] ss:$0 sm:$0xff] }
0x152e   :  { %v889_v59 = vadd.f32 %v888_v25, %v777_v52 }
0x1571   :  { %v999_v58 = vpop.xlane.xlu0 %998 }
0x1572   :  { %v1000_v28 = vmul.f32 %v999_v58, %v991_v14 }
0x1574   :  { %v1001_v12 = vadd.f32 %v1000_v28, %v889_v59 }
0x1576   :  { %1010 = vrot.lane.b32.xlu1 %v1001_v12, %s2797_s30  ;;  %v1524_v12 = vld [vmem:[#allocation2 + $0x118] sm:$0xf] }
0x15e8   :  { %v1011_v31 = vpop.permute.xlu1 %1010 }
0x15e9   :  { %2496 = vmatmul.mubr.msk.f32.vlgmr.msra.gmra.mxu1 %vm209_vm2, %v1011_v31  ;;  %v2300_v31 = vld [vmem:[#allocation2 + $0x108] ss:$0 sm:$0xff]  ;;  %vm2257_vm2 = vcmask 64544  }
0x15ea   :  { %2517 = vmatprep.mubr.msk.f32.mxu1 %vm2796_vm1, %v2795_v18  ;;  %2510 = vmatpush3.msra.mxu1 %v1178_v5  ;;  %v1695_v5 = vld [vmem:[#allocation2 + $0x148] sm:$0xff] }
0x15eb   :  { %2511 = vmatprep.subr.mxu1 %v2795_v18 }
0x15ec   :  { %2512 = vmatpush3.msra.mxu1 %v1177_v17  ;;  %v1694_v17 = vld [vmem:[#allocation2 + $0x140] sm:$0xff] }
0x15ed   :  { %2513 = vmatprep.subr.mxu1 %v2795_v18 }
0x15ee   :  { %2514 = vmatpush3.msra.mxu1 %v1176_v6  ;;  %v1692_v6 = vld [vmem:[#allocation2 + $0x130] sm:$0xff] }
0x15ef   :  { %2515 = vmatprep.subr.mxu1 %v2795_v18 }
0x15f0   :  { %2516 = vmatpush3.msra.mxu1 %v1175_v7  ;;  %v1691_v7 = vld [vmem:[#allocation2 + $0x128] sm:$0xff] }
0x15f1   :  { %2531 = vmatprep.subr.mxu1 %v2795_v18 }
0x16a9   :  { %v1080_v62 = vpop.f32.mrf.mxu1 }
0x16aa   :  { %v1081_v4 = vadd.f32 %v2290_v60, %v1080_v62 }
0x16ab   :  { %v2497_v29 = vpop.f32.mrf.mxu1 }
0x16ac   :  { %v1084_v63 = vand.u32 2147483647, %v1081_v4 }
0x16ae   :  { %v1085_v0 = vadd.f32 1.0, %v1084_v63  ;;  %v1523_v63 = vld [vmem:[#allocation2 + $0x110] sm:$0xff] }
0x16b0   :  { %2728 = vrcp.f32 %v1085_v0  ;;  %v1698_v0 = vld [vmem:[#allocation2 + $0x160] sm:$0xff] }
0x16bd   :  { %v2729_v2 = vpop.eup %2728 }
0x16be   :  { %v1087_v3 = vmul.f32 %v2729_v2, %v1081_v4  ;;  %v1697_v2 = vld [vmem:[#allocation2 + $0x158] sm:$0xff] }
0x16c0   :  { %2507 = vmatmul.mubr.msk.f32.vlgmr.msra.gmra.mxu0 %vm1097_vm3, %v1087_v3  ;;  %v1696_v3 = vld [vmem:[#allocation2 + $0x150] sm:$0xff] }
0x16c1   :  { %2528 = vmatprep.mubr.msk.f32.mxu0 %vm2796_vm1, %v2795_v18  ;;  %2521 = vmatpush3.msra.mxu0 %v1264_v27 }
0x16c2   :  { %2522 = vmatprep.subr.mxu0 %v2795_v18 }
0x16c3   :  { %2523 = vmatpush3.msra.mxu0 %v1263_v16 }
0x16c4   :  { %2524 = vmatprep.subr.mxu0 %v2795_v18 }
0x16c5   :  { %2525 = vmatpush3.msra.mxu0 %v1262_v21  ;;  %v1520_v21 = vlaneseq }
0x16c6   :  { %2526 = vmatprep.subr.mxu0 %v2795_v18 }
0x16c7   :  { %2527 = vmatpush3.msra.mxu0 %v1261_v22 }
0x16c8   :  { %2542 = vmatprep.subr.mxu0 %v2795_v18 }
0x1780   :  { %v1167_v9 = vpop.f32.mrf.mxu0 }
0x1781   :  { %v1168_v20 = vadd.f32 %v2292_v8, %v1167_v9 }
0x1782   :  { %v2508_v10 = vpop.f32.mrf.mxu0 }
0x1783   :  { %v1171_v11 = vand.u32 2147483647, %v1168_v20  ;;  %v2305_v10 = vld [vmem:[#allocation2 + $0x120] ss:$0 sm:$0xff] }
0x1785   :  { %v1172_v13 = vadd.f32 1.0, %v1171_v11 }
0x1787   :  { %2730 = vrcp.f32 %v1172_v13 }
0x1794   :  { %v2731_v14 = vpop.eup %2730 }
0x1795   :  { %v1174_v15 = vmul.f32 %v2731_v14, %v1168_v20 }
0x1797   :  { %2518 = vmatmul.mubr.msk.f32.vlgmr.msra.gmra.mxu1 %vm1097_vm3, %v1174_v15 }
0x1798   :  { %2539 = vmatprep.mubr.msk.f32.mxu1 %vm2796_vm1, %v2795_v18  ;;  %2532 = vmatpush3.msra.mxu1 %v1350_v37  ;;  %v1797_v37 = vld [vmem:[#allocation2 + $0x1a8] sm:$0xff] }
0x1799   :  { %2533 = vmatprep.subr.mxu1 %v2795_v18 }
0x179a   :  { %2534 = vmatpush3.msra.mxu1 %v1349_v38  ;;  %v1796_v38 = vld [vmem:[#allocation2 + $0x1a0] sm:$0xff] }
0x179b   :  { %2535 = vmatprep.subr.mxu1 %v2795_v18 }
0x179c   :  { %2536 = vmatpush3.msra.mxu1 %v1348_v39  ;;  %v1795_v39 = vld [vmem:[#allocation2 + $0x198] sm:$0xff] }
0x179d   :  { %2537 = vmatprep.subr.mxu1 %v2795_v18 }
0x179e   :  { %2538 = vmatpush3.msra.mxu1 %v1347_v40  ;;  %v1794_v40 = vld [vmem:[#allocation2 + $0x190] sm:$0xff] }
0x179f   :  { %2553 = vmatprep.subr.mxu1 %v2795_v18 }
0x1857   :  { %v1253_v24 = vpop.f32.mrf.mxu1 }
0x1858   :  { %v1254_v26 = vadd.f32 %v2294_v23, %v1253_v24  ;;  %v3100_v23 = vand.u32 127, %v1520_v21  ;;  %v1987_v21 = vld [vmem:[#allocation2 + $0x208] sm:$0xff] }
0x1859   :  { %v2519_v32 = vpop.f32.mrf.mxu1 }
0x185a   :  { %v1257_v33 = vand.u32 2147483647, %v1254_v26  ;;  %vm1522_vm7 = vcmp.lt.s32.totalorder %v3100_v23, 32 }
0x185c   :  { %v1258_v34 = vadd.f32 1.0, %v1257_v33 }
0x185e   :  { %2732 = vrcp.f32 %v1258_v34 }
0x186b   :  { %v2733_v35 = vpop.eup %2732 }
0x186c   :  { %v1260_v36 = vmul.f32 %v2733_v35, %v1254_v26 }
0x186e   :  { %2529 = vmatmul.mubr.msk.f32.vlgmr.msra.gmra.mxu0 %vm1097_vm3, %v1260_v36  ;;  %v3109_v36 = vld [vmem:[%s3194_s2] sm:$0xff] }
0x186f   :  { %2550 = vmatprep.mubr.msk.f32.mxu0 %vm2796_vm1, %v2795_v18  ;;  %2543 = vmatpush3.msra.mxu0 %v1436_v50 }
0x1870   :  { %2544 = vmatprep.subr.mxu0 %v2795_v18 }
0x1871   :  { %2545 = vmatpush3.msra.mxu0 %v1435_v51 }
0x1872   :  { %2546 = vmatprep.subr.mxu0 %v2795_v18 }
0x1873   :  { %2547 = vmatpush3.msra.mxu0 %v1434_v53 }
0x1874   :  { %2548 = vmatprep.subr.mxu0 %v2795_v18 }
0x1875   :  { %2549 = vmatpush3.msra.mxu0 %v1433_v54 }
0x1876   :  { %2563 = vmatprep.subr.mxu0 %v2795_v18 }
0x192e   :  { %v1339_v43 = vpop.f32.mrf.mxu0 }
0x192f   :  { %v1340_v44 = vadd.f32 %v2296_v42, %v1339_v43  ;;  %v1793_v42 = vld [vmem:[#allocation2 + $0x188] sm:$0xff]  ;;  %v1792_v43 = vld [vmem:[#allocation2 + $0x180] sm:$0xff] }
0x1930   :  { %v2530_v30 = vpop.f32.mrf.mxu0 }
0x1931   :  { %v1343_v45 = vand.u32 2147483647, %v1340_v44  ;;  %v1790_v30 = vld [vmem:[#allocation2 + $0x170] sm:$0xff] }
0x1933   :  { %v1344_v47 = vadd.f32 1.0, %v1343_v45  ;;  %v2307_v45 = vld [vmem:[#allocation2 + $0x168] ss:$0 sm:$0xff] }
0x1935   :  { %2734 = vrcp.f32 %v1344_v47 }
0x1942   :  { %v2735_v48 = vpop.eup %2734 }
0x1943   :  { %v1346_v49 = vmul.f32 %v2735_v48, %v1340_v44  ;;  %v1791_v44 = vld [vmem:[#allocation2 + $0x178] sm:$0xff] }
0x1945   :  { %2540 = vmatmul.mubr.msk.f32.vlgmr.msra.gmra.mxu1 %vm1097_vm3, %v1346_v49 }
0x1946   :  { %2555 = vmatprep.mubr.msk.f32.mxu1 %vm2796_vm1, %v2795_v18  ;;  %2554 = vmatpush3.msk.msra.mxu1 %vm1529_vm4, %v1524_v12  ;;  %v1894_v12 = vld [vmem:[#allocation2 + $0x1e8] sm:$0xff] }
0x1947   :  { %2558 = vmatprep.subr.mxu1 %v2795_v18 }
0x1a05   :  { %v1425_v56 = vpop.f32.mrf.mxu1 }
0x1a06   :  { %v1426_v57 = vadd.f32 %v2298_v55, %v1425_v56 }
0x1a07   :  { %v2541_v52 = vpop.f32.mrf.mxu1 }
0x1a08   :  { %v1429_v25 = vand.u32 2147483647, %v1426_v57 }
0x1a0a   :  { %v1430_v58 = vadd.f32 1.0, %v1429_v25 }
0x1a0c   :  { %2736 = vrcp.f32 %v1430_v58 }
0x1a19   :  { %v2737_v59 = vpop.eup %2736 }
0x1a1a   :  { %v1432_v28 = vmul.f32 %v2737_v59, %v1426_v57 }
0x1a1c   :  { %2551 = vmatmul.mubr.msk.f32.vlgmr.msra.gmra.mxu0 %vm1097_vm3, %v1432_v28  ;;  %v1895_v28 = vld [vmem:[#allocation2 + $0x1f0] sm:$0xff] }
0x1a1d   :  { %2579 = vmatprep.mubr.msk.f32.mxu0 %vm2796_vm1, %v2795_v18  ;;  %2564 = vmatpush3.msra.mxu0 %v1698_v0 }
0x1a1e   :  { %2565 = vmatprep.subr.mxu0 %v2795_v18 }
0x1a1f   :  { %2566 = vmatpush3.msra.mxu0 %v1697_v2 }
0x1a20   :  { %2567 = vmatprep.subr.mxu0 %v2795_v18 }
0x1a21   :  { %2568 = vmatpush3.msra.mxu0 %v1696_v3 }
0x1a22   :  { %2569 = vmatprep.subr.mxu0 %v2795_v18 }
0x1a23   :  { %2570 = vmatpush3.msra.mxu0 %v1695_v5 }
0x1a24   :  { %2571 = vmatprep.subr.mxu0 %v2795_v18 }
0x1a25   :  { %2572 = vmatpush3.msra.mxu0 %v1694_v17 }
0x1a26   :  { %2573 = vmatprep.subr.mxu0 %v2795_v18 }
0x1adc   :  { %v1511_v41 = vpop.f32.mrf.mxu0 }
0x1add   :  { %v1512_v61 = vadd.f32 %v2300_v31, %v1511_v41  ;;  %v1893_v31 = vld [vmem:[#allocation2 + $0x1e0] sm:$0xff]  ;;  %v1892_v41 = vld [vmem:[#allocation2 + $0x1d8] sm:$0xff] }
0x1ade   :  { %v2552_v19 = vpop.f32.mrf.mxu0 }
0x1adf   :  { %v1515_v46 = vand.u32 2147483647, %v1512_v61  ;;  %v1890_v19 = vld [vmem:[#allocation2 + $0x1c8] sm:$0xff] }
0x1ae1   :  { %v1516_v60 = vadd.f32 1.0, %v1515_v46  ;;  %v1889_v46 = vld [vmem:[#allocation2 + $0x1c0] sm:$0xff] }
0x1ae3   :  { %2738 = vrcp.f32 %v1516_v60  ;;  %v1888_v60 = vld [vmem:[#allocation2 + $0x1b8] sm:$0xff] }
0x1af0   :  { %v2739_v62 = vpop.eup %2738 }
0x1af1   :  { %v1518_v4 = vmul.f32 %v2739_v62, %v1512_v61  ;;  %v1891_v61 = vld [vmem:[#allocation2 + $0x1d0] sm:$0xff] }
0x1af2   :  { %v2310_v62 = vld [vmem:[#allocation2 + $0x1b0] ss:$0 sm:$0xff] }
0x1af3   :  { %v3082_v29 = vmul.f32 4.0, %v1518_v4 }
0x1af5   :  { %2556 = vmatmul.mubr.msk.f32.vlgmr.msra.gmra.mxu1 %vm1525_vm5, %v3082_v29 }
0x1af6   :  { %2559 = vmatpush3.msra.mxu1 %v1523_v63  ;;  %2560 = vmatprep.mubr.msk.f32.mxu1 %vm2796_vm1, %v2795_v18 }
0x1af7   :  { %2582 = vmatprep.subr.mxu1 %v2795_v18 }
0x1af9   :  { %2561 = vmatmul.mubr.msk.f32.vlgmr.msra.gmra.mxu1 %vm51_vm0, %v2822_v1  ;;  %v1693_v1 = vld [vmem:[#allocation2 + $0x138] sm:$0xff]  ;;  %vm2244_vm0 = vcmask 23552  }
0x1afa   :  { %2598 = vmatprep.mubr.msk.f32.mxu1 %vm2796_vm1, %v2795_v18  ;;  %2574 = vmatpush3.msra.mxu0 %v1693_v1 }
0x1afb   :  { %2575 = vmatprep.subr.mxu0 %v2795_v18  ;;  %2583 = vmatpush3.msra.mxu1 %v1797_v37 }
0x1afc   :  { %2576 = vmatpush3.msra.mxu0 %v1692_v6  ;;  %2584 = vmatprep.subr.mxu1 %v3109_v36 }
0x1afd   :  { %2577 = vmatprep.subr.mxu0 %v2795_v18  ;;  %2585 = vmatpush3.msra.mxu1 %v1796_v38 }
0x1afe   :  { %2578 = vmatpush3.msra.mxu0 %v1691_v7  ;;  %2586 = vmatprep.subr.mxu1 %v3109_v36 }
0x1aff   :  { %2601 = vmatprep.subr.mxu0 %v2795_v18  ;;  %2587 = vmatpush3.msra.mxu1 %v1795_v39 }
0x1b00   :  { %2588 = vmatprep.subr.mxu1 %v3109_v36 }
0x1b01   :  { %2589 = vmatpush3.msra.mxu1 %v1794_v40 }
0x1b02   :  { %2590 = vmatprep.subr.mxu1 %v3109_v36 }
0x1b03   :  { %2591 = vmatpush3.msra.mxu1 %v1793_v42 }
0x1b04   :  { %2592 = vmatprep.subr.mxu1 %v3109_v36 }
0x1b05   :  { %2593 = vmatpush3.msra.mxu1 %v1792_v43 }
0x1b06   :  { %2594 = vmatprep.subr.mxu1 %v3109_v36 }
0x1b07   :  { %2595 = vmatpush3.msra.mxu1 %v1791_v44 }
0x1b08   :  { %2596 = vmatprep.subr.mxu1 %v3109_v36 }
0x1b09   :  { %2597 = vmatpush3.msra.mxu1 %v1790_v30 }
0x1b0a   :  { %2620 = vmatprep.subr.mxu1 %v3109_v36 }
0x1bb5   :  { %v1599_v8 = vpop.f32.mrf.mxu1 }
0x1bb7   :  { %v2557_v9 = vpop.f32.mrf.mxu1 }
0x1bb9   :  { %v1669_v20 = vpop.f32.mrf.mxu1 }
0x1bba   :  { %v1670_v11 = vadd.f32 %v1669_v20, %v1599_v8 }
0x1bbb   :  { %v2562_v13 = vpop.f32.mrf.mxu1 }
0x1bbc   :  { %v1678_v14 = vadd.f32 %v2305_v10, %v1670_v11  ;;  %v1993_v11 = vld [vmem:[#allocation2 + $0x238] sm:$0xff]  ;;  %v1992_v13 = vld [vmem:[#allocation2 + $0x230] sm:$0xff] }
0x1bbe   :  { %v1680_v15 = vmul.f32 1.442695, %v1678_v14  ;;  %v1686_v27 = vand.u32 2147483647, %v1678_v14  ;;  %vm1679_vm6 = vcmp.gt.f32.partialorder %v1678_v14, 0.0 }
0x1bc0   :  { %2740 = vpow2.f32 %v1680_v15  ;;  %v1687_v16 = vadd.f32 1.0, %v1686_v27  ;;  %v1990_v15 = vld [vmem:[#allocation2 + $0x220] sm:$0xff]  ;;  %v1989_v27 = vld [vmem:[#allocation2 + $0x218] sm:$0xff] }
0x1bc2   :  { %2742 = vrcp.f32 %v1687_v16  ;;  %v1988_v16 = vld [vmem:[#allocation2 + $0x210] sm:$0xff] }
0x1bcd   :  { %v2741_v22 = vpop.eup %2740 }
0x1bce   :  { %v2306_v24 = vadd.f32 -1.0, %v2741_v22  ;;  %v1986_v22 = vld [vmem:[#allocation2 + $0x200] sm:$0xff] }
0x1bcf   :  { %v2743_v26 = vpop.eup %2742 }
0x1bd0   :  { %v1683_v32 = vmul.f32 1.6732632, %v2306_v24  ;;  %v1689_v34 = vmul.f32 %v2743_v26, %v1678_v14  ;;  %v2313_v24 = vld [vmem:[#allocation2 + $0x1f8] ss:$0 sm:$0xff] }
0x1bd2   :  { %v1684_v18 = vsel %vm1679_vm6, %v1678_v14, %v1683_v32  ;;  %v1991_v14 = vld [vmem:[#allocation2 + $0x228] sm:$0xff] }
0x1bd3   :  { %v1685_v33 = vmul.f32 1.050701, %v1684_v18 }
0x1bd5   :  { %v1690_v35 = vsel %vm1522_vm7, %v1685_v33, %v1689_v34 }
0x1bd6   :  { %2580 = vmatmul.mubr.msk.f32.vlgmr.msra.gmra.mxu0 %vm1704_vm8, %v1690_v35 }
0x1bd7   :  { %2617 = vmatprep.mubr.msk.f32.mxu0 %vm2796_vm1, %v3109_v36  ;;  %2602 = vmatpush3.msra.mxu0 %v1895_v28 }
0x1bd8   :  { %2603 = vmatprep.subr.mxu0 %v3109_v36 }
0x1bd9   :  { %2604 = vmatpush3.msra.mxu0 %v1894_v12 }
0x1bda   :  { %2605 = vmatprep.subr.mxu0 %v3109_v36 }
0x1bdb   :  { %2606 = vmatpush3.msra.mxu0 %v1893_v31 }
0x1bdc   :  { %2607 = vmatprep.subr.mxu0 %v3109_v36 }
0x1bdd   :  { %2608 = vmatpush3.msra.mxu0 %v1892_v41 }
0x1bde   :  { %2609 = vmatprep.subr.mxu0 %v3109_v36 }
0x1bdf   :  { %2610 = vmatpush3.msra.mxu0 %v1891_v61 }
0x1be0   :  { %2611 = vmatprep.subr.mxu0 %v3109_v36 }
0x1be1   :  { %2612 = vmatpush3.msra.mxu0 %v1890_v19 }
0x1be2   :  { %2613 = vmatprep.subr.mxu0 %v3109_v36 }
0x1be3   :  { %2614 = vmatpush3.msra.mxu0 %v1889_v46 }
0x1be4   :  { %2615 = vmatprep.subr.mxu0 %v3109_v36 }
0x1be5   :  { %2616 = vmatpush3.msra.mxu0 %v1888_v60  ;;  %v2319_v60 = vld [vmem:[#allocation2 + $0x288] ss:$0 sm:$0xff] }
0x1be6   :  { %2639 = vmatprep.subr.mxu0 %v3109_v36 }
0x1c96   :  { %v1774_v47 = vpop.f32.mrf.mxu0 }
0x1c97   :  { %v1775_v48 = vadd.f32 %v2307_v45, %v1774_v47  ;;  %v2091_v45 = vld [vmem:[#allocation2 + $0x280] sm:$0xff]  ;;  %v2090_v47 = vld [vmem:[#allocation2 + $0x278] sm:$0xff] }
0x1c98   :  { %v2581_v49 = vpop.f32.mrf.mxu0 }
0x1c99   :  { %v1779_v50 = vmul.f32 1.442695, %v1775_v48  ;;  %v1785_v51 = vand.u32 2147483647, %v1775_v48  ;;  %vm1778_vm9 = vcmp.gt.f32.partialorder %v1775_v48, 0.0  ;;  %v2088_v49 = vld [vmem:[#allocation2 + $0x268] sm:$0xff] }
0x1c9b   :  { %2744 = vpow2.f32 %v1779_v50  ;;  %v1786_v53 = vadd.f32 1.0, %v1785_v51  ;;  %v2087_v50 = vld [vmem:[#allocation2 + $0x260] sm:$0xff]  ;;  %v2086_v51 = vld [vmem:[#allocation2 + $0x258] sm:$0xff] }
0x1c9d   :  { %2746 = vrcp.f32 %v1786_v53  ;;  %v2085_v53 = vld [vmem:[#allocation2 + $0x250] sm:$0xff] }
0x1ca8   :  { %v2745_v54 = vpop.eup %2744 }
0x1ca9   :  { %v2309_v55 = vadd.f32 -1.0, %v2745_v54  ;;  %v2084_v54 = vld [vmem:[#allocation2 + $0x248] sm:$0xff] }
0x1caa   :  { %v2747_v56 = vpop.eup %2746 }
0x1cab   :  { %v1782_v57 = vmul.f32 1.6732632, %v2309_v55  ;;  %v1788_v58 = vmul.f32 %v2747_v56, %v1775_v48  ;;  %v2316_v55 = vld [vmem:[#allocation2 + $0x240] ss:$0 sm:$0xff] }
0x1cad   :  { %v1783_v52 = vsel %vm1778_vm9, %v1775_v48, %v1782_v57  ;;  %v2089_v48 = vld [vmem:[#allocation2 + $0x270] sm:$0xff] }
0x1cae   :  { %v1784_v25 = vmul.f32 1.050701, %v1783_v52 }
0x1cb0   :  { %v1789_v59 = vsel %vm1522_vm7, %v1784_v25, %v1788_v58 }
0x1cb1   :  { %2599 = vmatmul.mubr.msk.f32.vlgmr.msra.gmra.mxu1 %vm1704_vm8, %v1789_v59 }
0x1cb2   :  { %2636 = vmatprep.mubr.msk.f32.mxu1 %vm2796_vm1, %v3109_v36  ;;  %2621 = vmatpush3.msra.mxu1 %v1993_v11 }
0x1cb3   :  { %2622 = vmatprep.subr.mxu1 %v3109_v36 }
0x1cb4   :  { %2623 = vmatpush3.msra.mxu1 %v1992_v13 }
0x1cb5   :  { %2624 = vmatprep.subr.mxu1 %v3109_v36 }
0x1cb6   :  { %2625 = vmatpush3.msra.mxu1 %v1991_v14 }
0x1cb7   :  { %2626 = vmatprep.subr.mxu1 %v3109_v36 }
0x1cb8   :  { %2627 = vmatpush3.msra.mxu1 %v1990_v15 }
0x1cb9   :  { %2628 = vmatprep.subr.mxu1 %v3109_v36 }
0x1cba   :  { %2629 = vmatpush3.msra.mxu1 %v1989_v27 }
0x1cbb   :  { %2630 = vmatprep.subr.mxu1 %v3109_v36 }
0x1cbc   :  { %2631 = vmatpush3.msra.mxu1 %v1988_v16 }
0x1cbd   :  { %2632 = vmatprep.subr.mxu1 %v3109_v36 }
0x1cbe   :  { %2633 = vmatpush3.msra.mxu1 %v1987_v21 }
0x1cbf   :  { %2634 = vmatprep.subr.mxu1 %v3109_v36 }
0x1cc0   :  { %2635 = vmatpush3.msra.mxu1 %v1986_v22 }
0x1d71   :  { %v1872_v4 = vpop.f32.mrf.mxu1 }
0x1d72   :  { %v1873_v63 = vadd.f32 %v2310_v62, %v1872_v4 }
0x1d73   :  { %v2600_v0 = vpop.f32.mrf.mxu1 }
0x1d74   :  { %v1877_v2 = vmul.f32 1.442695, %v1873_v63  ;;  %v1883_v3 = vand.u32 2147483647, %v1873_v63  ;;  %vm1876_vm10 = vcmp.gt.f32.partialorder %v1873_v63, 0.0 }
0x1d76   :  { %2748 = vpow2.f32 %v1877_v2  ;;  %v1884_v5 = vadd.f32 1.0, %v1883_v3 }
0x1d78   :  { %2750 = vrcp.f32 %v1884_v5 }
0x1d83   :  { %v2749_v17 = vpop.eup %2748 }
0x1d84   :  { %v2312_v1 = vadd.f32 -1.0, %v2749_v17 }
0x1d85   :  { %v2751_v6 = vpop.eup %2750 }
0x1d86   :  { %v1880_v7 = vmul.f32 1.6732632, %v2312_v1  ;;  %v1886_v20 = vmul.f32 %v2751_v6, %v1873_v63 }
0x1d88   :  { %v1881_v8 = vsel %vm1876_vm10, %v1873_v63, %v1880_v7 }
0x1d89   :  { %v1882_v9 = vmul.f32 1.050701, %v1881_v8 }
0x1d8b   :  { %v1887_v10 = vsel %vm1522_vm7, %v1882_v9, %v1886_v20 }
0x1d8c   :  { %2618 = vmatmul.mubr.msk.f32.vlgmr.msra.gmra.mxu0 %vm1704_vm8, %v1887_v10 }
0x1d8d   :  { %2655 = vmatprep.mubr.msk.f32.mxu0 %vm2796_vm1, %v3109_v36  ;;  %2640 = vmatpush3.msra.mxu0 %v2091_v45  ;;  %vm2252_vm1 = vcmask 31768  }
0x1d8e   :  { %2641 = vmatprep.subr.mxu0 %v3109_v36 }
0x1d8f   :  { %2642 = vmatpush3.msra.mxu0 %v2090_v47 }
0x1d90   :  { %2643 = vmatprep.subr.mxu0 %v3109_v36 }
0x1d91   :  { %2644 = vmatpush3.msra.mxu0 %v2089_v48 }
0x1d92   :  { %2645 = vmatprep.subr.mxu0 %v3109_v36 }
0x1d93   :  { %2646 = vmatpush3.msra.mxu0 %v2088_v49 }
0x1d94   :  { %2647 = vmatprep.subr.mxu0 %v3109_v36 }
0x1d95   :  { %2648 = vmatpush3.msra.mxu0 %v2087_v50 }
0x1d96   :  { %2649 = vmatprep.subr.mxu0 %v3109_v36 }
0x1d97   :  { %2650 = vmatpush3.msra.mxu0 %v2086_v51 }
0x1d98   :  { %2651 = vmatprep.subr.mxu0 %v3109_v36 }
0x1d99   :  { %2652 = vmatpush3.msra.mxu0 %v2085_v53 }
0x1d9a   :  { %2653 = vmatprep.subr.mxu0 %v3109_v36 }
0x1d9b   :  { %2654 = vmatpush3.msra.mxu0 %v2084_v54 }
0x1e4c   :  { %v1970_v26 = vpop.f32.mrf.mxu0 }
0x1e4d   :  { %v1971_v32 = vadd.f32 %v2313_v24, %v1970_v26 }
0x1e4e   :  { %v2619_v18 = vpop.f32.mrf.mxu0 }
0x1e4f   :  { %v1975_v33 = vmul.f32 1.442695, %v1971_v32  ;;  %v1981_v34 = vand.u32 2147483647, %v1971_v32  ;;  %vm1974_vm11 = vcmp.gt.f32.partialorder %v1971_v32, 0.0 }
0x1e51   :  { %2752 = vpow2.f32 %v1975_v33  ;;  %v1982_v35 = vadd.f32 1.0, %v1981_v34 }
0x1e53   :  { %2754 = vrcp.f32 %v1982_v35 }
0x1e5e   :  { %v2753_v37 = vpop.eup %2752 }
0x1e5f   :  { %v2315_v38 = vadd.f32 -1.0, %v2753_v37 }
0x1e60   :  { %v2755_v39 = vpop.eup %2754 }
0x1e61   :  { %v1978_v40 = vmul.f32 1.6732632, %v2315_v38  ;;  %v1984_v44 = vmul.f32 %v2755_v39, %v1971_v32 }
0x1e63   :  { %v1979_v42 = vsel %vm1974_vm11, %v1971_v32, %v1978_v40 }
0x1e64   :  { %v1980_v43 = vmul.f32 1.050701, %v1979_v42 }
0x1e66   :  { %v1985_v30 = vsel %vm1522_vm7, %v1980_v43, %v1984_v44 }
0x1e67   :  { %2637 = vmatmul.mubr.msk.f32.vlgmr.msra.gmra.mxu1 %vm1704_vm8, %v1985_v30 }
0x1f27   :  { %v2068_v56 = vpop.f32.mrf.mxu1 }
0x1f28   :  { %v2069_v57 = vadd.f32 %v2316_v55, %v2068_v56 }
0x1f29   :  { %v2638_v52 = vpop.f32.mrf.mxu1 }
0x1f2a   :  { %v2073_v25 = vmul.f32 1.442695, %v2069_v57  ;;  %v2079_v58 = vand.u32 2147483647, %v2069_v57  ;;  %vm2072_vm12 = vcmp.gt.f32.partialorder %v2069_v57, 0.0 }
0x1f2c   :  { %2756 = vpow2.f32 %v2073_v25  ;;  %v2080_v59 = vadd.f32 1.0, %v2079_v58 }
0x1f2e   :  { %2758 = vrcp.f32 %v2080_v59 }
0x1f39   :  { %v2757_v28 = vpop.eup %2756 }
0x1f3a   :  { %v2318_v12 = vadd.f32 -1.0, %v2757_v28 }
0x1f3b   :  { %v2759_v31 = vpop.eup %2758 }
0x1f3c   :  { %v2076_v41 = vmul.f32 1.6732632, %v2318_v12  ;;  %v2082_v46 = vmul.f32 %v2759_v31, %v2069_v57 }
0x1f3e   :  { %v2077_v61 = vsel %vm2072_vm12, %v2069_v57, %v2076_v41 }
0x1f3f   :  { %v2078_v19 = vmul.f32 1.050701, %v2077_v61 }
0x1f41   :  { %v2083_v36 = vsel %vm1522_vm7, %v2078_v19, %v2082_v46 }
0x1f42   :  { %2656 = vmatmul.mubr.msk.f32.vlgmr.msra.gmra.mxu0 %vm1704_vm8, %v2083_v36 }
0x2002   :  { %v2166_v62 = vpop.f32.mrf.mxu0 }
0x2003   :  { %v3159_v4 = vadd.f32 %v2319_v60, %v2166_v62 }
0x2004   :  { %v2657_v63 = vpop.f32.mrf.mxu0 }
0x2005   :  { %v2170_v0 = vand.u32 2147483647, %v3159_v4 }
0x2007   :  { %v2171_v2 = vadd.f32 1.0, %v2170_v0 }
0x2009   :  { %2760 = vrcp.f32 %v2171_v2 }
0x2016   :  { %v2761_v3 = vpop.eup %2760 }
0x2017   :  { %v3163_v5 = vmul.f32 %v2761_v3, %v3159_v4 }
0x2019   :  { %v2175_v23 = vsel %vm2174_vm13, %v3163_v5, inf  ;;  %v2185_v17 = vsel %vm2174_vm13, %v3163_v5, -inf  ;;  %v2195_v1 = vsel %vm2174_vm13, %v3163_v5, 0.0 }
0x201a   :  { %2176 = vmin.xlane.f32.xlu0 %v2175_v23 }
0x201e   :  { %2186 = vmax.xlane.f32.xlu0 %v2185_v17 }
0x2022   :  { %2196 = vadd.xlane.f32.xlu0 %v2195_v1 }
0x20a3   :  { %v2177_v6 = vpop.xlane.xlu0 %2176 }
0x20a4   :  { %v2178_v7 = vrot.slane %v2177_v6, 4 }
0x20a6   :  { %v2179_v8 = vmin.f32 %v2177_v6, %v2178_v7 }
0x20a7   :  { %v2187_v9 = vpop.xlane.xlu0 %2186 }
0x20a8   :  { %v2180_v20 = vrot.slane %v2179_v8, 2  ;;  %v2188_v10 = vrot.slane %v2187_v9, 4 }
0x20aa   :  { %v2189_v11 = vmax.f32 %v2187_v9, %v2188_v10  ;;  %v2181_v13 = vmin.f32 %v2179_v8, %v2180_v20 }
0x20ab   :  { %v2197_v14 = vpop.xlane.xlu0 %2196 }
0x20ac   :  { %v2190_v15 = vrot.slane %v2189_v11, 2  ;;  %v2198_v27 = vrot.slane %v2197_v14, 4  ;;  %v2182_v16 = vrot.slane %v2181_v13, 1 }
0x20ae   :  { %v2199_v21 = vadd.f32 %v2198_v27, %v2197_v14  ;;  %v2183_v22 = vmin.f32 %v2181_v13, %v2182_v16  ;;  %v2191_v24 = vmax.f32 %v2189_v11, %v2190_v15 }
0x20b0   :  { %v2200_v26 = vrot.slane %v2199_v21, 2  ;;  %2660 = vpush %v2183_v22  ;;  %v2192_v32 = vrot.slane %v2191_v24, 1 }
0x20b2   :  { %v2193_v18 = vmax.f32 %v2191_v24, %v2192_v32  ;;  %v2201_v33 = vadd.f32 %v2200_v26, %v2199_v21 }
0x20b4   :  { %2662 = vpush %v2193_v18  ;;  %v2202_v34 = vrot.slane %v2201_v33, 1 }
0x20b6   :  { %v2203_v35 = vadd.f32 %v2202_v34, %v2201_v33 }
0x20b8   :  { %2664 = vpush %v2203_v35 }
0x20e1   :  { %s3171_s10 = spop %2660 }
0x20e2   :  { %v2233_v56 = vstv %s3171_s10 }
0x20e3   :  { %v2234_v57 = vsub.f32 %v3163_v5, %v2233_v56 }
0x20e5   :  { %s3173_s11 = spop %2662 }
0x20e6   :  { %s2240_s12 = ssub.f32 %s3173_s11, %s3171_s10 }
0x20e8   :  { %v2241_v55 = vstv %s2240_s12 }
0x20e9   :  { %s2665_s13 = spop %2664 }
0x20ea   :  { %s2207_s14 = smul.f32 0.083333336, %s2665_s13 }
0x20ec   :  { %v2208_v37 = vstv %s2207_s14 }
0x20ed   :  { %v2209_v38 = vsub.f32 %v3163_v5, %v2208_v37 }
0x20ef   :  { %v2210_v39 = vmul.f32 %v2209_v38, %v2209_v38 }
0x20f1   :  { %v2211_v40 = vsel %vm2174_vm13, %v2210_v39, 0.0 }
0x20f2   :  { %2212 = vadd.xlane.f32.xlu0 %v2211_v40 }
0x2108   :  { %2254 = vrot.lane.b32.xlu0 %v3082_v29, %s2800_s15 }
0x217b   :  { %v2213_v42 = vpop.xlane.xlu0 %2212 }
0x217c   :  { %v2214_v43 = vrot.slane %v2213_v42, 4 }
0x217e   :  { %v2215_v44 = vadd.f32 %v2214_v43, %v2213_v42 }
0x217f   :  { %v2255_v61 = vpop.permute.xlu0 %2254 }
0x2180   :  { %v2216_v30 = vrot.slane %v2215_v44, 2 }
0x2182   :  { %v2217_v45 = vadd.f32 %v2216_v30, %v2215_v44 }
0x2184   :  { %v2218_v47 = vrot.slane %v2217_v45, 1 }
0x2186   :  { %v2219_v48 = vadd.f32 %v2218_v47, %v2217_v45 }
0x2188   :  { %2666 = vpush %v2219_v48 }
0x21b9   :  { %s2667_s16 = spop %2666 }
0x21ba   :  { %s2223_s17 = smul.f32 0.09090909, %s2667_s16 }
0x21bc   :  { %v2224_v49 = vstv %s2223_s17 }
0x21bd   :  { %2762 = vrsqrt.f32 %v2224_v49  ;;  %vm2227_vm14 = vcmp.eq.f32.partialorder %v2224_v49, inf  ;;  %v2230_v53 = vand.u32 2147483648, %v2224_v49  ;;  %vm2229_vm15 = vcmp.eq.f32.partialorder %v2224_v49, 0.0 }
0x21be   :  { %2764 = vrcp.f32 %v2241_v55 }
0x21ca   :  { %v2763_v50 = vpop.eup %2762 }
0x21cb   :  { %v2226_v51 = vmul.f32 %v2763_v50, %v2224_v49  ;;  %v2765_v58 = vpop.eup %2764 }
0x21cd   :  { %v2228_v54 = vsel %vm2227_vm14, %v2224_v49, %v2226_v51 }
0x21ce   :  { %v2231_v29 = vsel %vm2229_vm15, %v2230_v53, %v2228_v54 }
0x21cf   :  { %2668 = vpush %v2231_v29 }
0x2200   :  { %s2669_s18 = spop %2668 }
0x2201   :  { %s2237_s19 = smul.f32 0.1, %s2669_s18 }
0x2203   :  { %v2238_v52 = vstv %s2237_s19 }
0x2204   :  { %v2239_v25 = vadd.f32 %v2238_v52, %v2234_v57 }
0x2206   :  { %v2243_v59 = vmul.f32 %v2765_v58, %v2239_v25 }
0x2208   :  { %v2245_v28 = vsel %vm2244_vm0, %v2243_v59, 0.0 }
0x2209   :  { %2246 = vadd.xlane.f32.xlu1 %v2245_v28 }
0x2292   :  { %v2247_v12 = vpop.xlane.xlu1 %2246 }
0x2293   :  { %2766 = vrcp.f32 %v2247_v12 }
0x22a0   :  { %v2767_v31 = vpop.eup %2766 }
0x22a1   :  { %v2249_v41 = vmul.f32 %v2767_v31, %v2243_v59 }
0x22a3   :  { %2251 = vst.msk [vmem:[%s3194_s2] sm:$0xff] %vm2244_vm0, %v2249_v41 }
0x22a4   :  { %2253 = vst.msk [vmem:[%s3194_s2] sm:$0xff] %vm2252_vm1, %v3159_v4 }
0x22a5   :  { %2258 = vst.msk [vmem:[%s3194_s2] sm:$0xff] %vm2257_vm2, %v2255_v61 }
0x22a6   :  { %2263 = vsyncpa [#allocation3], 1 }

</bundles_post_ra>
